<compile_context>
chip_gen: v7x
topology: tpu7x:2x2x1
jax: 0.10.0
libtpu: 0.0.40
codegen_flags: <defaults>
</compile_context>

<pallas_src>
import jax
import jax.numpy as jnp
from jax.experimental import pallas as pl
from jax.experimental.pallas import tpu as pltpu


# ----------------------------------------------------------------------------
# Fused kernel: 3x GCN layers + global_max_pool + Linear + log_softmax
# ----------------------------------------------------------------------------
def _make_kernel(*, n_pad, block_rows, n_rblocks, num_graphs, n_layers=3):
    def kernel(offs_ref,                                # SMEM (G+1,) int32
               x_ref, a_hbm_ref,
               w1_ref, b1_ref, w2_ref, b2_ref, w3_ref, b3_ref,
               wl_ref, bl_ref,
               o_ref,
               a_vmem, h1_scr, h2_scr, h3_scr, dma_sem):
        l = pl.program_id(0)                            # layer phase (0..2)
        r = pl.program_id(1)                            # row block
        row_start = pl.multiple_of(r * block_rows, block_rows)

        def a_copy(rb):
            return pltpu.make_async_copy(
                a_hbm_ref.at[pl.ds(rb * block_rows, block_rows), :],
                a_vmem.at[pl.ds(rb * block_rows, block_rows), :],
                dma_sem.at[rb % 2])

        # --- A_hat: HBM -> VMEM exactly once (layer 0), one block ahead ------
        @pl.when(jnp.logical_and(l == 0, r == 0))
        def _():
            a_copy(0).start()

        @pl.when(l == 0)
        def _():
            a_copy(r).wait()

        @pl.when(jnp.logical_and(l == 0, r + 1 < n_rblocks))
        def _():
            a_copy(r + 1).start()

        a_blk = a_vmem[pl.ds(row_start, block_rows), :]          # (br, N) bf16

        def gcn_layer(h_prev, w_ref, b_ref, out_scr, apply_relu):
            # (A_hat @ H) @ W + b  ==  A_hat @ (H @ W) + b.
            # bf16 MXU operands, f32 accumulation.
            ah = jnp.dot(a_blk, h_prev, preferred_element_type=jnp.float32)
            h = jnp.dot(ah.astype(jnp.bfloat16), w_ref[...],
                        preferred_element_type=jnp.float32) + b_ref[...]
            if apply_relu:
                h = jnp.maximum(h, 0.0)       # dropout: identity (eval mode)
            out_scr[pl.ds(row_start, block_rows), :] = h.astype(out_scr.dtype)

        @pl.when(l == 0)
        def _():
            gcn_layer(x_ref[...], w1_ref, b1_ref, h1_scr, True)

        @pl.when(l == 1)
        def _():
            gcn_layer(h1_scr[...], w2_ref, b2_ref, h2_scr, True)

        @pl.when(l == 2)
        def _():
            gcn_layer(h2_scr[...], w3_ref, b3_ref, h3_scr, False)

        # --- final step: segment max pool + Linear + log_softmax -------------
        @pl.when(jnp.logical_and(l == n_layers - 1, r == n_rblocks - 1))
        def _():
            h3 = h3_scr[...]                                     # (N, F3) bf16
            neg = jnp.asarray(-1e30, dtype=h3.dtype)
            node_id = jax.lax.broadcasted_iota(jnp.int32, (n_pad, 1), 0)
            rows = []
            for g in range(num_graphs):                          # static G
                start = offs_ref[g]
                end = offs_ref[g + 1]
                in_g = jnp.logical_and(node_id >= start, node_id < end)
                masked = jnp.where(in_g, h3, neg)
                rows.append(jnp.max(masked, axis=0, keepdims=True))
            pooled = jnp.concatenate(rows, axis=0)               # (G, F3) bf16

            logits = jnp.dot(pooled, wl_ref[...],
                             preferred_element_type=jnp.float32) + bl_ref[...]
            m = jnp.max(logits, axis=1, keepdims=True)
            z = logits - m
            lse = jnp.log(jnp.sum(jnp.exp(z), axis=1, keepdims=True))
            o_ref[...] = (z - lse).astype(o_ref.dtype)

    return kernel


def net_forward(params, x, a_hat, graph_offsets, *, block_rows=None):
    """Fused GCN-Net forward.  graph_offsets: int32 (G+1,) node offsets of the
    (contiguous, sorted) PyG-style batch."""
    n_real, f_in = x.shape
    num_graphs = int(graph_offsets.shape[0]) - 1
    f1 = params["w1"].shape[1]
    f2 = params["w2"].shape[1]
    f3 = params["w3"].shape[1]
    n_cls = params["w_lin"].shape[1]
    n_layers = 3

    # Pad the node dimension to a lane-aligned size.  Zero rows/cols of A_hat
    # are inert, and padded nodes are excluded from pooling by the offsets.
    n_pad = ((n_real + 127) // 128) * 128
    if block_rows is None:
        block_rows = min(512, n_pad)
    assert block_rows % 8 == 0 and n_pad % block_rows == 0, (block_rows, n_pad)
    n_rblocks = n_pad // block_rows

    bf16 = jnp.bfloat16
    a_pad = jnp.zeros((n_pad, n_pad), bf16).at[:n_real, :n_real].set(
        a_hat.astype(bf16))
    x_pad = jnp.zeros((n_pad, f_in), bf16).at[:n_real, :].set(x.astype(bf16))

    w1 = params["w1"].astype(bf16)
    w2 = params["w2"].astype(bf16)
    w3 = params["w3"].astype(bf16)
    wl = params["w_lin"].astype(bf16)
    b1 = params["b1"].astype(jnp.float32)
    b2 = params["b2"].astype(jnp.float32)
    b3 = params["b3"].astype(jnp.float32)
    bl = params["b_lin"].astype(jnp.float32)

    kernel = _make_kernel(n_pad=n_pad, block_rows=block_rows,
                          n_rblocks=n_rblocks, num_graphs=num_graphs,
                          n_layers=n_layers)

    def const(shape):
        return pl.BlockSpec(shape, lambda l, r, offs: (0,) * len(shape))

    grid_spec = pltpu.PrefetchScalarGridSpec(
        num_scalar_prefetch=1,                 # graph offsets -> SMEM
        grid=(n_layers, n_rblocks),
        in_specs=[
            const((n_pad, f_in)),              # x (bf16, resident)
            pl.BlockSpec(memory_space=pl.ANY),  # A_hat (bf16, raw HBM ref)
            const((f_in, f1)), const((1, f1)),
            const((f1, f2)), const((1, f2)),
            const((f2, f3)), const((1, f3)),
            const((f3, n_cls)), const((1, n_cls)),
        ],
        out_specs=const((num_graphs, n_cls)),
        scratch_shapes=[
            pltpu.VMEM((n_pad, n_pad), bf16),  # resident A_hat (loaded once)
            pltpu.VMEM((n_pad, f1), bf16),     # H1
            pltpu.VMEM((n_pad, f2), bf16),     # H2
            pltpu.VMEM((n_pad, f3), bf16),     # H3
            pltpu.SemaphoreType.DMA((2,)),     # A_hat double-buffered DMA
        ],
    )

    # Explicit VMEM budget: resident A_hat + H scratches + parameter blocks,
    # with headroom; floor at 16 MiB, cap under v7x's 64 MiB physical VMEM.
    lane = lambda f: max(f, 128)
    est = (n_pad * n_pad * 2
           + n_pad * (lane(f1) + lane(f2) + lane(f3)) * 2
           + 2 * n_pad * lane(f_in) * 2
           + 2 * 4 * (f_in * lane(f1) + f1 * lane(f2)
                      + f2 * lane(f3) + f3 * lane(n_cls))
           + (1 << 20))
    vmem_limit = int(min(60 * 1024 * 1024, max(16 * 1024 * 1024,
                                               est + (4 << 20))))

    return pl.pallas_call(
        kernel,
        out_shape=jax.ShapeDtypeStruct((num_graphs, n_cls), jnp.float32),
        grid_spec=grid_spec,
        compiler_params=pltpu.CompilerParams(
            # Both axes are sequential: layer l+1 reads the full layer-l H
            # held in per-core VMEM scratch, so the row axis cannot be split
            # across v7x's TensorCores inside this fused call.
            dimension_semantics=("arbitrary", "arbitrary"),
            vmem_limit_bytes=vmem_limit,
        ),
    )(graph_offsets.astype(jnp.int32), x_pad, a_pad,
      w1, b1, w2, b2, w3, b3, wl, bl)


# ----------------------------------------------------------------------------
# Glue (plain JAX): normalized adjacency, params, pure-JAX reference
# ----------------------------------------------------------------------------
def build_normalized_adjacency(edge_index, num_nodes):
    """PyG gcn_norm semantics: messages flow src -> dst (propagation matrix is
    A[dst, src]); duplicate edges sum; self-loops added only where missing."""
    src, dst = edge_index[0], edge_index[1]
    a = jnp.zeros((num_nodes, num_nodes), jnp.float32)
    a = a.at[dst, src].add(1.0)
    diag = jnp.diagonal(a)
    a = a + jnp.diag(jnp.where(diag > 0.0, 0.0, 1.0))   # add_remaining_self_loops
    deg = jnp.sum(a, axis=1)
    d_inv_sqrt = jnp.where(deg > 0.0, 1.0 / jnp.sqrt(deg), 0.0)
    return d_inv_sqrt[:, None] * a * d_inv_sqrt[None, :]


def glorot(key, shape):
    fan_in, fan_out = shape
    limit = jnp.sqrt(6.0 / (fan_in + fan_out))
    return jax.random.uniform(key, shape, jnp.float32, -limit, limit)


def reference_forward(params, x, a_hat, graph_offsets, num_graphs, emulate_bf16):
    """Pure-JAX reference.  emulate_bf16=True mirrors the kernel's numerics
    (bf16 matmul operands, f32 accumulation, bf16-stored H)."""
    low = jnp.bfloat16 if emulate_bf16 else jnp.float32
    cast = lambda v: v.astype(low)
    hp = jax.lax.Precision.HIGHEST

    a_c = cast(a_hat)
    h = cast(x)
    for wk, bk, act in (("w1", "b1", True), ("w2", "b2", True),
                        ("w3", "b3", False)):
        ah = jnp.dot(a_c, h, preferred_element_type=jnp.float32, precision=hp)
        h = jnp.dot(cast(ah), cast(params[wk]),
                    preferred_element_type=jnp.float32, precision=hp) + params[bk]
        if act:
            h = jnp.maximum(h, 0.0)          # dropout: identity in eval mode
        h = cast(h)
    h = h.astype(jnp.float32)

    offs = [int(v) for v in graph_offsets]
    pooled = jnp.concatenate(
        [jnp.max(h[offs[g]:offs[g + 1]], axis=0, keepdims=True)
         for g in range(num_graphs)], axis=0)
    logits = jnp.dot(cast(pooled), cast(params["w_lin"]),
                     preferred_element_type=jnp.float32,
                     precision=hp) + params["b_lin"]
    return jax.nn.log_softmax(logits, axis=1)


if __name__ == "__main__":
    # Small deterministic problem: 2 chain graphs of 8 nodes each (16 nodes),
    # 2 input features, bidirectional edges.
    key = jax.random.PRNGKey(0)
    k_x, k1, k2, k3, k4 = jax.random.split(key, 5)

    num_graphs, nodes_per_graph = 2, 8
    n_real = num_graphs * nodes_per_graph
    f_in, d1, d2, d3, n_cls = 2, 8, 32, 128, 3

    x = jax.random.normal(k_x, (n_real, f_in), jnp.float32)

    src_list, dst_list = [], []
    for g in range(num_graphs):
        base = g * nodes_per_graph
        for i in range(nodes_per_graph - 1):
            src_list += [base + i, base + i + 1]
            dst_list += [base + i + 1, base + i]
    edge_index = jnp.array([src_list, dst_list], dtype=jnp.int32)

    # PyG-style batch: graphs occupy contiguous, sorted node ranges.
    graph_offsets = jnp.array([0, nodes_per_graph, n_real], dtype=jnp.int32)

    a_hat = build_normalized_adjacency(edge_index, n_real)

    # Deterministic parameters (glorot weights; PyG GCNConv zero-inits its
    # bias; Linear bias set to zero for determinism).
    params = {
        "w1": glorot(k1, (f_in, d1)), "b1": jnp.zeros((1, d1), jnp.float32),
        "w2": glorot(k2, (d1, d2)),   "b2": jnp.zeros((1, d2), jnp.float32),
        "w3": glorot(k3, (d2, d3)),   "b3": jnp.zeros((1, d3), jnp.float32),
        "w_lin": glorot(k4, (d3, n_cls)),
        "b_lin": jnp.zeros((1, n_cls), jnp.float32),
    }

    # block_rows=64 -> 2 row blocks at n_pad=128, exercising the pipelined
    # A_hat DMA path and the (layer, row-block) grid.
    out = net_forward(params, x, a_hat, graph_offsets, block_rows=64)
    out = jax.block_until_ready(out)
    assert out.shape == (num_graphs, n_cls)

    # rows of log_softmax must sum to ~1 in prob space
    assert jnp.allclose(jnp.exp(out).sum(axis=1), 1.0, atol=1e-4)

    # tight check vs a reference that emulates the kernel's bf16 MXU numerics,
    # loose check vs the pure-f32 reference (original PyTorch semantics).
    ref_bf16 = reference_forward(params, x, a_hat, graph_offsets, num_graphs, True)
    ref_f32 = reference_forward(params, x, a_hat, graph_offsets, num_graphs, False)
    assert jnp.allclose(out, ref_bf16, atol=5e-3, rtol=5e-3), (out, ref_bf16)
    assert jnp.allclose(out, ref_f32, atol=5e-2, rtol=5e-2), (out, ref_f32)

    print("KERNEL_OK")
</pallas_src>

<mosaic_0001>
module attributes {stable_mosaic.version = 11 : i64} {
  func.func @kernel(%arg0: i32, %arg1: i32, %arg2: memref<3xi32, #tpu.memory_space<smem>>, %arg3: memref<128x2xbf16, #tpu.memory_space<vmem>>, %arg4: memref<128x128xbf16, #tpu.memory_space<any>>, %arg5: memref<2x8xbf16, #tpu.memory_space<vmem>>, %arg6: memref<1x8xf32, #tpu.memory_space<vmem>>, %arg7: memref<8x32xbf16, #tpu.memory_space<vmem>>, %arg8: memref<1x32xf32, #tpu.memory_space<vmem>>, %arg9: memref<32x128xbf16, #tpu.memory_space<vmem>>, %arg10: memref<1x128xf32, #tpu.memory_space<vmem>>, %arg11: memref<128x3xbf16, #tpu.memory_space<vmem>>, %arg12: memref<1x3xf32, #tpu.memory_space<vmem>>, %arg13: memref<2x3xf32, #tpu.memory_space<vmem>>, %arg14: memref<128x128xbf16, #tpu.memory_space<vmem>>, %arg15: memref<128x8xbf16, #tpu.memory_space<vmem>>, %arg16: memref<128x32xbf16, #tpu.memory_space<vmem>>, %arg17: memref<128x128xbf16, #tpu.memory_space<vmem>>, %arg18: memref<2x!tpu.dma_semaphore, #tpu.memory_space<semaphore_mem>>) attributes {dimension_semantics = [#tpu.dimension_semantics<arbitrary>, #tpu.dimension_semantics<arbitrary>], iteration_bounds = array<i64: 3, 2>, scalar_prefetch = 1 : i64, scratch_operands = 5 : i64, tpu.core_type = #tpu.core_type<tc>, window_params = [{pipeline_mode = #tpu.pipeline_mode<synchronous>, transform_indices = @transform_0, window_bounds = array<i64: 128, 2>}, {}, {pipeline_mode = #tpu.pipeline_mode<synchronous>, transform_indices = @transform_2, window_bounds = array<i64: 2, 8>}, {pipeline_mode = #tpu.pipeline_mode<synchronous>, transform_indices = @transform_3, window_bounds = array<i64: 1, 8>}, {pipeline_mode = #tpu.pipeline_mode<synchronous>, transform_indices = @transform_4, window_bounds = array<i64: 8, 32>}, {pipeline_mode = #tpu.pipeline_mode<synchronous>, transform_indices = @transform_5, window_bounds = array<i64: 1, 32>}, {pipeline_mode = #tpu.pipeline_mode<synchronous>, transform_indices = @transform_6, window_bounds = array<i64: 32, 128>}, {pipeline_mode = #tpu.pipeline_mode<synchronous>, transform_indices = @transform_7, window_bounds = array<i64: 1, 128>}, {pipeline_mode = #tpu.pipeline_mode<synchronous>, transform_indices = @transform_8, window_bounds = array<i64: 128, 3>}, {pipeline_mode = #tpu.pipeline_mode<synchronous>, transform_indices = @transform_9, window_bounds = array<i64: 1, 3>}, {pipeline_mode = #tpu.pipeline_mode<synchronous>, transform_indices = @transform_10, window_bounds = array<i64: 2, 3>}]} {
    %c64_i32 = arith.constant 64 : i32
    %0 = arith.muli %arg1, %c64_i32 : i32
    %1 = tpu.assume_multiple %0, 64 : i32
    %c0_i32 = arith.constant 0 : i32
    %2 = arith.cmpi eq, %arg0, %c0_i32 : i32
    %c0_i32_0 = arith.constant 0 : i32
    %3 = arith.cmpi eq, %arg1, %c0_i32_0 : i32
    %4 = arith.andi %2, %3 : i1
    %5 = arith.extui %4 : i1 to i32
    %c0_i32_1 = arith.constant 0 : i32
    %6 = arith.cmpi ne, %5, %c0_i32_1 : i32
    scf.if %6 {
      %c0_i32_15 = arith.constant 0 : i32
      %c0_i32_16 = arith.constant 0 : i32
      %c0_i32_17 = arith.constant 0 : i32
      %32 = tpu.memref_slice %arg4[%c0_i32_16, %c0_i32_17] : memref<128x128xbf16, #tpu.memory_space<any>> -> memref<64x128xbf16, #tpu.memory_space<any>>
      %c0_i32_18 = arith.constant 0 : i32
      %c0_i32_19 = arith.constant 0 : i32
      %33 = tpu.memref_slice %arg14[%c0_i32_18, %c0_i32_19] : memref<128x128xbf16, #tpu.memory_space<vmem>> -> memref<64x128xbf16, #tpu.memory_space<vmem>>
      %34 = tpu.memref_slice %arg18[%c0_i32_15] : memref<2x!tpu.dma_semaphore, #tpu.memory_space<semaphore_mem>> -> memref<1x!tpu.dma_semaphore, #tpu.memory_space<semaphore_mem>>
      %35 = tpu.memref_squeeze %34 : memref<1x!tpu.dma_semaphore, #tpu.memory_space<semaphore_mem>> -> memref<!tpu.dma_semaphore, #tpu.memory_space<semaphore_mem>>
      tpu.enqueue_dma source(%32 : memref<64x128xbf16, #tpu.memory_space<any>>) target(%33 : memref<64x128xbf16, #tpu.memory_space<vmem>>) target_semaphore(%35 : memref<!tpu.dma_semaphore, #tpu.memory_space<semaphore_mem>>)
    } else {
    }
    %c0_i32_2 = arith.constant 0 : i32
    %7 = arith.cmpi eq, %arg0, %c0_i32_2 : i32
    %8 = arith.extui %7 : i1 to i32
    %c0_i32_3 = arith.constant 0 : i32
    %9 = arith.cmpi ne, %8, %c0_i32_3 : i32
    scf.if %9 {
      %c64_i32_15 = arith.constant 64 : i32
      %32 = arith.muli %arg1, %c64_i32_15 : i32
      %c64_i32_16 = arith.constant 64 : i32
      %33 = arith.muli %arg1, %c64_i32_16 : i32
      %c2_i32_17 = arith.constant 2 : i32
      %c0_i32_18 = arith.constant 0 : i32
      %34 = arith.cmpi eq, %c2_i32_17, %c0_i32_18 : i32
      %c1_i32_19 = arith.constant 1 : i32
      %35 = arith.select %34, %c1_i32_19, %c2_i32_17 : i32
      %36 = arith.remsi %arg1, %35 : i32
      %c0_i32_20 = arith.constant 0 : i32
      %37 = arith.cmpi ne, %36, %c0_i32_20 : i32
      %c0_i32_21 = arith.constant 0 : i32
      %38 = arith.cmpi slt, %36, %c0_i32_21 : i32
      %c0_i32_22 = arith.constant 0 : i32
      %39 = arith.cmpi slt, %35, %c0_i32_22 : i32
      %40 = arith.xori %38, %39 : i1
      %41 = arith.andi %40, %37 : i1
      %42 = arith.addi %36, %35 : i32
      %43 = arith.select %41, %42, %36 : i32
      %c0_i32_23 = arith.constant 0 : i32
      %44 = tpu.memref_slice %arg4[%32, %c0_i32_23] : memref<128x128xbf16, #tpu.memory_space<any>> -> memref<64x128xbf16, #tpu.memory_space<any>>
      %c0_i32_24 = arith.constant 0 : i32
      %45 = tpu.memref_slice %arg14[%33, %c0_i32_24] : memref<128x128xbf16, #tpu.memory_space<vmem>> -> memref<64x128xbf16, #tpu.memory_space<vmem>>
      %46 = tpu.memref_slice %arg18[%43] : memref<2x!tpu.dma_semaphore, #tpu.memory_space<semaphore_mem>> -> memref<1x!tpu.dma_semaphore, #tpu.memory_space<semaphore_mem>>
      %47 = tpu.memref_squeeze %46 : memref<1x!tpu.dma_semaphore, #tpu.memory_space<semaphore_mem>> -> memref<!tpu.dma_semaphore, #tpu.memory_space<semaphore_mem>>
      tpu.wait_dma2 semaphore(%47 : memref<!tpu.dma_semaphore, #tpu.memory_space<semaphore_mem>>) src(%44 : memref<64x128xbf16, #tpu.memory_space<any>>) dst(%45 : memref<64x128xbf16, #tpu.memory_space<vmem>>)
    } else {
    }
    %c0_i32_4 = arith.constant 0 : i32
    %10 = arith.cmpi eq, %arg0, %c0_i32_4 : i32
    %c1_i32 = arith.constant 1 : i32
    %11 = arith.addi %arg1, %c1_i32 : i32
    %c2_i32 = arith.constant 2 : i32
    %12 = arith.cmpi slt, %11, %c2_i32 : i32
    %13 = arith.andi %10, %12 : i1
    %14 = arith.extui %13 : i1 to i32
    %c0_i32_5 = arith.constant 0 : i32
    %15 = arith.cmpi ne, %14, %c0_i32_5 : i32
    scf.if %15 {
      %c1_i32_15 = arith.constant 1 : i32
      %32 = arith.addi %arg1, %c1_i32_15 : i32
      %c64_i32_16 = arith.constant 64 : i32
      %33 = arith.muli %32, %c64_i32_16 : i32
      %c64_i32_17 = arith.constant 64 : i32
      %34 = arith.muli %32, %c64_i32_17 : i32
      %c2_i32_18 = arith.constant 2 : i32
      %c0_i32_19 = arith.constant 0 : i32
      %35 = arith.cmpi eq, %c2_i32_18, %c0_i32_19 : i32
      %c1_i32_20 = arith.constant 1 : i32
      %36 = arith.select %35, %c1_i32_20, %c2_i32_18 : i32
      %37 = arith.remsi %32, %36 : i32
      %c0_i32_21 = arith.constant 0 : i32
      %38 = arith.cmpi ne, %37, %c0_i32_21 : i32
      %c0_i32_22 = arith.constant 0 : i32
      %39 = arith.cmpi slt, %37, %c0_i32_22 : i32
      %c0_i32_23 = arith.constant 0 : i32
      %40 = arith.cmpi slt, %36, %c0_i32_23 : i32
      %41 = arith.xori %39, %40 : i1
      %42 = arith.andi %41, %38 : i1
      %43 = arith.addi %37, %36 : i32
      %44 = arith.select %42, %43, %37 : i32
      %c0_i32_24 = arith.constant 0 : i32
      %45 = tpu.memref_slice %arg4[%33, %c0_i32_24] : memref<128x128xbf16, #tpu.memory_space<any>> -> memref<64x128xbf16, #tpu.memory_space<any>>
      %c0_i32_25 = arith.constant 0 : i32
      %46 = tpu.memref_slice %arg14[%34, %c0_i32_25] : memref<128x128xbf16, #tpu.memory_space<vmem>> -> memref<64x128xbf16, #tpu.memory_space<vmem>>
      %47 = tpu.memref_slice %arg18[%44] : memref<2x!tpu.dma_semaphore, #tpu.memory_space<semaphore_mem>> -> memref<1x!tpu.dma_semaphore, #tpu.memory_space<semaphore_mem>>
      %48 = tpu.memref_squeeze %47 : memref<1x!tpu.dma_semaphore, #tpu.memory_space<semaphore_mem>> -> memref<!tpu.dma_semaphore, #tpu.memory_space<semaphore_mem>>
      tpu.enqueue_dma source(%45 : memref<64x128xbf16, #tpu.memory_space<any>>) target(%46 : memref<64x128xbf16, #tpu.memory_space<vmem>>) target_semaphore(%48 : memref<!tpu.dma_semaphore, #tpu.memory_space<semaphore_mem>>)
    } else {
    }
    %16 = arith.index_cast %1 : i32 to index
    %c0 = arith.constant 0 : index
    %17 = vector.load %arg14[%16, %c0] : memref<128x128xbf16, #tpu.memory_space<vmem>>, vector<64x128xbf16>
    %c0_i32_6 = arith.constant 0 : i32
    %18 = arith.cmpi eq, %arg0, %c0_i32_6 : i32
    %19 = arith.extui %18 : i1 to i32
    %c0_i32_7 = arith.constant 0 : i32
    %20 = arith.cmpi ne, %19, %c0_i32_7 : i32
    scf.if %20 {
      %c0_15 = arith.constant 0 : index
      %c0_16 = arith.constant 0 : index
      %32 = vector.load %arg3[%c0_15, %c0_16] : memref<128x2xbf16, #tpu.memory_space<vmem>>, vector<128x2xbf16>
      %cst = arith.constant dense<0.000000e+00> : vector<64x2xf32>
      %33 = tpu.matmul %17, %32, %cst {dimension_numbers = #tpu.dot_dimension_numbers<[1], [0], [0], [1], [0, 0, 1, 1], [], []>} : vector<64x128xbf16>, vector<128x2xbf16>, vector<64x2xf32> -> vector<64x2xf32>
      %34 = arith.truncf %33 : vector<64x2xf32> to vector<64x2xbf16>
      %c0_17 = arith.constant 0 : index
      %c0_18 = arith.constant 0 : index
      %35 = vector.load %arg5[%c0_17, %c0_18] : memref<2x8xbf16, #tpu.memory_space<vmem>>, vector<2x8xbf16>
      %cst_19 = arith.constant dense<0.000000e+00> : vector<64x8xf32>
      %36 = tpu.matmul %34, %35, %cst_19 {dimension_numbers = #tpu.dot_dimension_numbers<[1], [0], [0], [1], [0, 0, 1, 1], [], []>} : vector<64x2xbf16>, vector<2x8xbf16>, vector<64x8xf32> -> vector<64x8xf32>
      %c0_20 = arith.constant 0 : index
      %c0_21 = arith.constant 0 : index
      %37 = vector.load %arg6[%c0_20, %c0_21] : memref<1x8xf32, #tpu.memory_space<vmem>>, vector<1x8xf32>
      %38 = vector.broadcast %37 : vector<1x8xf32> to vector<64x8xf32>
      %39 = arith.addf %36, %38 : vector<64x8xf32>
      %cst_22 = arith.constant 0.000000e+00 : f32
      %40 = vector.broadcast %cst_22 : f32 to vector<64x8xf32>
      %41 = arith.maximumf %39, %40 : vector<64x8xf32>
      %42 = arith.truncf %41 : vector<64x8xf32> to vector<64x8xbf16>
      %43 = arith.index_cast %1 : i32 to index
      %c0_23 = arith.constant 0 : index
      %44 = vector.load %arg15[%43, %c0_23] : memref<128x8xbf16, #tpu.memory_space<vmem>>, vector<64x8xbf16>
      tpu.vector_store %arg15[%43, %c0_23], %42 {strides = array<i32>} : memref<128x8xbf16, #tpu.memory_space<vmem>>, vector<64x8xbf16>,
    } else {
    }
    %c1_i32_8 = arith.constant 1 : i32
    %21 = arith.cmpi eq, %arg0, %c1_i32_8 : i32
    %22 = arith.extui %21 : i1 to i32
    %c0_i32_9 = arith.constant 0 : i32
    %23 = arith.cmpi ne, %22, %c0_i32_9 : i32
    scf.if %23 {
      %c0_15 = arith.constant 0 : index
      %c0_16 = arith.constant 0 : index
      %32 = vector.load %arg15[%c0_15, %c0_16] : memref<128x8xbf16, #tpu.memory_space<vmem>>, vector<128x8xbf16>
      %cst = arith.constant dense<0.000000e+00> : vector<64x8xf32>
      %33 = tpu.matmul %17, %32, %cst {dimension_numbers = #tpu.dot_dimension_numbers<[1], [0], [0], [1], [0, 0, 1, 1], [], []>} : vector<64x128xbf16>, vector<128x8xbf16>, vector<64x8xf32> -> vector<64x8xf32>
      %34 = arith.truncf %33 : vector<64x8xf32> to vector<64x8xbf16>
      %c0_17 = arith.constant 0 : index
      %c0_18 = arith.constant 0 : index
      %35 = vector.load %arg7[%c0_17, %c0_18] : memref<8x32xbf16, #tpu.memory_space<vmem>>, vector<8x32xbf16>
      %cst_19 = arith.constant dense<0.000000e+00> : vector<64x32xf32>
      %36 = tpu.matmul %34, %35, %cst_19 {dimension_numbers = #tpu.dot_dimension_numbers<[1], [0], [0], [1], [0, 0, 1, 1], [], []>} : vector<64x8xbf16>, vector<8x32xbf16>, vector<64x32xf32> -> vector<64x32xf32>
      %c0_20 = arith.constant 0 : index
      %c0_21 = arith.constant 0 : index
      %37 = vector.load %arg8[%c0_20, %c0_21] : memref<1x32xf32, #tpu.memory_space<vmem>>, vector<1x32xf32>
      %38 = vector.broadcast %37 : vector<1x32xf32> to vector<64x32xf32>
      %39 = arith.addf %36, %38 : vector<64x32xf32>
      %cst_22 = arith.constant 0.000000e+00 : f32
      %40 = vector.broadcast %cst_22 : f32 to vector<64x32xf32>
      %41 = arith.maximumf %39, %40 : vector<64x32xf32>
      %42 = arith.truncf %41 : vector<64x32xf32> to vector<64x32xbf16>
      %43 = arith.index_cast %1 : i32 to index
      %c0_23 = arith.constant 0 : index
      %44 = vector.load %arg16[%43, %c0_23] : memref<128x32xbf16, #tpu.memory_space<vmem>>, vector<64x32xbf16>
      tpu.vector_store %arg16[%43, %c0_23], %42 {strides = array<i32>} : memref<128x32xbf16, #tpu.memory_space<vmem>>, vector<64x32xbf16>,
    } else {
    }
    %c2_i32_10 = arith.constant 2 : i32
    %24 = arith.cmpi eq, %arg0, %c2_i32_10 : i32
    %25 = arith.extui %24 : i1 to i32
    %c0_i32_11 = arith.constant 0 : i32
    %26 = arith.cmpi ne, %25, %c0_i32_11 : i32
    scf.if %26 {
      %c0_15 = arith.constant 0 : index
      %c0_16 = arith.constant 0 : index
      %32 = vector.load %arg16[%c0_15, %c0_16] : memref<128x32xbf16, #tpu.memory_space<vmem>>, vector<128x32xbf16>
      %cst = arith.constant dense<0.000000e+00> : vector<64x32xf32>
      %33 = tpu.matmul %17, %32, %cst {dimension_numbers = #tpu.dot_dimension_numbers<[1], [0], [0], [1], [0, 0, 1, 1], [], []>} : vector<64x128xbf16>, vector<128x32xbf16>, vector<64x32xf32> -> vector<64x32xf32>
      %34 = arith.truncf %33 : vector<64x32xf32> to vector<64x32xbf16>
      %c0_17 = arith.constant 0 : index
      %c0_18 = arith.constant 0 : index
      %35 = vector.load %arg9[%c0_17, %c0_18] : memref<32x128xbf16, #tpu.memory_space<vmem>>, vector<32x128xbf16>
      %cst_19 = arith.constant dense<0.000000e+00> : vector<64x128xf32>
      %36 = tpu.matmul %34, %35, %cst_19 {dimension_numbers = #tpu.dot_dimension_numbers<[1], [0], [0], [1], [0, 0, 1, 1], [], []>} : vector<64x32xbf16>, vector<32x128xbf16>, vector<64x128xf32> -> vector<64x128xf32>
      %c0_20 = arith.constant 0 : index
      %c0_21 = arith.constant 0 : index
      %37 = vector.load %arg10[%c0_20, %c0_21] : memref<1x128xf32, #tpu.memory_space<vmem>>, vector<1x128xf32>
      %38 = vector.broadcast %37 : vector<1x128xf32> to vector<64x128xf32>
      %39 = arith.addf %36, %38 : vector<64x128xf32>
      %40 = arith.truncf %39 : vector<64x128xf32> to vector<64x128xbf16>
      %41 = arith.index_cast %1 : i32 to index
      %c0_22 = arith.constant 0 : index
      %42 = vector.load %arg17[%41, %c0_22] : memref<128x128xbf16, #tpu.memory_space<vmem>>, vector<64x128xbf16>
      tpu.vector_store %arg17[%41, %c0_22], %40 {strides = array<i32>} : memref<128x128xbf16, #tpu.memory_space<vmem>>, vector<64x128xbf16>,
    } else {
    }
    %c2_i32_12 = arith.constant 2 : i32
    %27 = arith.cmpi eq, %arg0, %c2_i32_12 : i32
    %c1_i32_13 = arith.constant 1 : i32
    %28 = arith.cmpi eq, %arg1, %c1_i32_13 : i32
    %29 = arith.andi %27, %28 : i1
    %30 = arith.extui %29 : i1 to i32
    %c0_i32_14 = arith.constant 0 : i32
    %31 = arith.cmpi ne, %30, %c0_i32_14 : i32
    scf.if %31 {
      %c0_15 = arith.constant 0 : index
      %c0_16 = arith.constant 0 : index
      %32 = vector.load %arg17[%c0_15, %c0_16] : memref<128x128xbf16, #tpu.memory_space<vmem>>, vector<128x128xbf16>
      %33 = tpu.iota {dimensions = array<i32: 0>} : vector<128x1xi32>
      %c0_17 = arith.constant 0 : index
      %34 = memref.load %arg2[%c0_17] : memref<3xi32, #tpu.memory_space<smem>>
      %c1 = arith.constant 1 : index
      %35 = memref.load %arg2[%c1] : memref<3xi32, #tpu.memory_space<smem>>
      %36 = vector.broadcast %34 : i32 to vector<128x1xi32>
      %37 = arith.cmpi sge, %33, %36 : vector<128x1xi32>
      %38 = vector.broadcast %35 : i32 to vector<128x1xi32>
      %39 = arith.cmpi slt, %33, %38 : vector<128x1xi32>
      %40 = arith.andi %37, %39 : vector<128x1xi1>
      %cst = arith.constant -1.000260e+30 : bf16
      %41 = vector.shape_cast %40 : vector<128x1xi1> to vector<128x1xi1>
      %42 = vector.broadcast %41 : vector<128x1xi1> to vector<128x128xi1>
      %43 = vector.broadcast %cst : bf16 to vector<128x128xbf16>
      %44 = arith.select %42, %32, %43 : vector<128x128xi1>, vector<128x128xbf16>
      %cst_18 = arith.constant dense<0xFF80> : vector<128xbf16>
      %45 = vector.multi_reduction <maximumf>, %44, %cst_18 [0] : vector<128x128xbf16> to vector<128xbf16>
      %46 = vector.shape_cast %45 : vector<128xbf16> to vector<1x128xbf16>
      %c1_19 = arith.constant 1 : index
      %47 = memref.load %arg2[%c1_19] : memref<3xi32, #tpu.memory_space<smem>>
      %c2 = arith.constant 2 : index
      %48 = memref.load %arg2[%c2] : memref<3xi32, #tpu.memory_space<smem>>
      %49 = vector.broadcast %47 : i32 to vector<128x1xi32>
      %50 = arith.cmpi sge, %33, %49 : vector<128x1xi32>
      %51 = vector.broadcast %48 : i32 to vector<128x1xi32>
      %52 = arith.cmpi slt, %33, %51 : vector<128x1xi32>
      %53 = arith.andi %50, %52 : vector<128x1xi1>
      %cst_20 = arith.constant -1.000260e+30 : bf16
      %54 = vector.shape_cast %53 : vector<128x1xi1> to vector<128x1xi1>
      %55 = vector.broadcast %54 : vector<128x1xi1> to vector<128x128xi1>
      %56 = vector.broadcast %cst_20 : bf16 to vector<128x128xbf16>
      %57 = arith.select %55, %32, %56 : vector<128x128xi1>, vector<128x128xbf16>
      %cst_21 = arith.constant dense<0xFF80> : vector<128xbf16>
      %58 = vector.multi_reduction <maximumf>, %57, %cst_21 [0] : vector<128x128xbf16> to vector<128xbf16>
      %59 = vector.shape_cast %58 : vector<128xbf16> to vector<1x128xbf16>
      %60 = tpu.concatenate %46, %59 in 0 : vector<1x128xbf16>, vector<1x128xbf16> -> vector<2x128xbf16>
      %c0_22 = arith.constant 0 : index
      %c0_23 = arith.constant 0 : index
      %61 = vector.load %arg11[%c0_22, %c0_23] : memref<128x3xbf16, #tpu.memory_space<vmem>>, vector<128x3xbf16>
      %cst_24 = arith.constant dense<0.000000e+00> : vector<2x3xf32>
      %62 = tpu.matmul %60, %61, %cst_24 {dimension_numbers = #tpu.dot_dimension_numbers<[1], [0], [0], [1], [0, 0, 1, 1], [], []>} : vector<2x128xbf16>, vector<128x3xbf16>, vector<2x3xf32> -> vector<2x3xf32>
      %c0_25 = arith.constant 0 : index
      %c0_26 = arith.constant 0 : index
      %63 = vector.load %arg12[%c0_25, %c0_26] : memref<1x3xf32, #tpu.memory_space<vmem>>, vector<1x3xf32>
      %64 = vector.broadcast %63 : vector<1x3xf32> to vector<2x3xf32>
      %65 = arith.addf %62, %64 : vector<2x3xf32>
      %cst_27 = arith.constant dense<0xFF800000> : vector<2xf32>
      %66 = vector.multi_reduction <maximumf>, %65, %cst_27 [1] : vector<2x3xf32> to vector<2xf32>
      %67 = vector.shape_cast %66 : vector<2xf32> to vector<2x1xf32>
      %68 = vector.broadcast %67 : vector<2x1xf32> to vector<2x3xf32>
      %69 = arith.subf %65, %68 : vector<2x3xf32>
      %70 = math.exp %69 : vector<2x3xf32>
      %cst_28 = arith.constant dense<0.000000e+00> : vector<2xf32>
      %71 = vector.multi_reduction <add>, %70, %cst_28 [1] : vector<2x3xf32> to vector<2xf32>
      %72 = vector.shape_cast %71 : vector<2xf32> to vector<2x1xf32>
      %73 = math.log %72 : vector<2x1xf32>
      %74 = vector.broadcast %73 : vector<2x1xf32> to vector<2x3xf32>
      %75 = arith.subf %69, %74 : vector<2x3xf32>
      %c0_29 = arith.constant 0 : index
      %c0_30 = arith.constant 0 : index
      %76 = vector.load %arg13[%c0_29, %c0_30] : memref<2x3xf32, #tpu.memory_space<vmem>>, vector<2x3xf32>
      tpu.vector_store %arg13[%c0_29, %c0_30], %75 {strides = array<i32>} : memref<2x3xf32, #tpu.memory_space<vmem>>, vector<2x3xf32>,
    } else {
    }
    return
  }
  func.func @transform_0(%arg0: i32, %arg1: i32, %arg2: memref<3xi32, #tpu.memory_space<smem>>) -> (i32, i32) {
    %c0_i32 = arith.constant 0 : i32
    %c0_i32_0 = arith.constant 0 : i32
    %c0_i32_1 = arith.constant 0 : i32
    return %c0_i32, %c0_i32_0 : i32, i32
  }
  func.func @transform_2(%arg0: i32, %arg1: i32, %arg2: memref<3xi32, #tpu.memory_space<smem>>) -> (i32, i32) {
    %c0_i32 = arith.constant 0 : i32
    %c0_i32_0 = arith.constant 0 : i32
    %c0_i32_1 = arith.constant 0 : i32
    return %c0_i32, %c0_i32_0 : i32, i32
  }
  func.func @transform_3(%arg0: i32, %arg1: i32, %arg2: memref<3xi32, #tpu.memory_space<smem>>) -> (i32, i32) {
    %c0_i32 = arith.constant 0 : i32
    %c0_i32_0 = arith.constant 0 : i32
    %c0_i32_1 = arith.constant 0 : i32
    return %c0_i32, %c0_i32_0 : i32, i32
  }
  func.func @transform_4(%arg0: i32, %arg1: i32, %arg2: memref<3xi32, #tpu.memory_space<smem>>) -> (i32, i32) {
    %c0_i32 = arith.constant 0 : i32
    %c0_i32_0 = arith.constant 0 : i32
    %c0_i32_1 = arith.constant 0 : i32
    return %c0_i32, %c0_i32_0 : i32, i32
  }
  func.func @transform_5(%arg0: i32, %arg1: i32, %arg2: memref<3xi32, #tpu.memory_space<smem>>) -> (i32, i32) {
    %c0_i32 = arith.constant 0 : i32
    %c0_i32_0 = arith.constant 0 : i32
    %c0_i32_1 = arith.constant 0 : i32
    return %c0_i32, %c0_i32_0 : i32, i32
  }
  func.func @transform_6(%arg0: i32, %arg1: i32, %arg2: memref<3xi32, #tpu.memory_space<smem>>) -> (i32, i32) {
    %c0_i32 = arith.constant 0 : i32
    %c0_i32_0 = arith.constant 0 : i32
    %c0_i32_1 = arith.constant 0 : i32
    return %c0_i32, %c0_i32_0 : i32, i32
  }
  func.func @transform_7(%arg0: i32, %arg1: i32, %arg2: memref<3xi32, #tpu.memory_space<smem>>) -> (i32, i32) {
    %c0_i32 = arith.constant 0 : i32
    %c0_i32_0 = arith.constant 0 : i32
    %c0_i32_1 = arith.constant 0 : i32
    return %c0_i32, %c0_i32_0 : i32, i32
  }
  func.func @transform_8(%arg0: i32, %arg1: i32, %arg2: memref<3xi32, #tpu.memory_space<smem>>) -> (i32, i32) {
    %c0_i32 = arith.constant 0 : i32
    %c0_i32_0 = arith.constant 0 : i32
    %c0_i32_1 = arith.constant 0 : i32
    return %c0_i32, %c0_i32_0 : i32, i32
  }
  func.func @transform_9(%arg0: i32, %arg1: i32, %arg2: memref<3xi32, #tpu.memory_space<smem>>) -> (i32, i32) {
    %c0_i32 = arith.constant 0 : i32
    %c0_i32_0 = arith.constant 0 : i32
    %c0_i32_1 = arith.constant 0 : i32
    return %c0_i32, %c0_i32_0 : i32, i32
  }
  func.func @transform_10(%arg0: i32, %arg1: i32, %arg2: memref<3xi32, #tpu.memory_space<smem>>) -> (i32, i32) {
    %c0_i32 = arith.constant 0 : i32
    %c0_i32_0 = arith.constant 0 : i32
    %c0_i32_1 = arith.constant 0 : i32
    return %c0_i32, %c0_i32_0 : i32, i32
  }
}

</mosaic_0001>

<bundles_post_ra>
// kernel: tpu_custom_call.1
= control target key start
LH: loop header
LB: loop body
LE: loop exit
PB: predicated region body
PF: predicated region fallthrough
CT: control target
= control target key end

     0   :  { %s3103_s0 = inlined_call_operand.vmem [shape: s32[3], index: 0, kind: input, shape index: {}]   ;;  %s3104_s1 = inlined_call_operand.vmem [shape: bf16[128,2], index: 1, kind: input, shape index: {}]   ;;  %s3105_s2 = inlined_call_operand.vmem [shape: bf16[128,128], index: 2, kind: input, shape index: {}]   ;;  %s3106_s3 = inlined_call_operand.vmem [shape: bf16[2,8], index: 3, kind: input, shape index: {}]   ;;  %s3107_s4 = inlined_call_operand.vmem [shape: f32[1,8], index: 4, kind: input, shape index: {}]   ;;  %s3108_s5 = inlined_call_operand.vmem [shape: bf16[8,32], index: 5, kind: input, shape index: {}]   ;;  %s3109_s6 = inlined_call_operand.vmem [shape: f32[1,32], index: 6, kind: input, shape index: {}]   ;;  %s3110_s7 = inlined_call_operand.vmem [shape: bf16[32,128], index: 7, kind: input, shape index: {}]   ;;  %s3111_s8 = inlined_call_operand.vmem [shape: f32[1,128], index: 8, kind: input, shape index: {}]   ;;  %s3112_s9 = inlined_call_operand.vmem [shape: bf16[128,3], index: 9, kind: input, shape index: {}]   ;;  %s3113_s10 = inlined_call_operand.vmem [shape: f32[1,3], index: 10, kind: input, shape index: {}]   ;;  %s3114_s11 = inlined_call_operand.hbm [shape: f32[2,3], index: 11, kind: output, shape index: {}]  }
   0x1   :  { %s16_s19 = sshll.u32 %s3103_s0, 4  ;;  %s17_s19 = int_to_ptr.vmem [resolvable:$true] %s16_s19 }
   0x2   :  { %s2045_s20 = scalar_lea.vmem %s17_s19, 16  ;;  %p2050_p1 = scmp.lt.s32.totalorder %s17_s19, %s17_s19 }
   0x3   :  { %p2046_p0 = scmp.ne.s32.totalorder %s17_s19, %s2045_s20  ;;  %p2051_p2 = scmp.lt.s32.totalorder %s2045_s20, %s2045_s20 }
   0x5   :  { %p2052_p3 = por %p2051_p2, %p2050_p1 }
   0x7   :  { %p2053_p4 = pnand %p2052_p3, %p2046_p0 }
   0x9   :  { %2056 = shalt.err (!%p2053_p4)  }
   0xa   :  { %s2133_s21 = smov [#allocation8]  }
   0xb   :  { %19 = dma.vmem_to_smem %s17_s19, 16, %s2133_s21, [#allocation7] }
   0xc   :  { %2103 = dma.done.wait [#allocation7], 16 }
   0xd   :  { %2104 = vsyncadd [#allocation7], 4294967280 }
   0xe   :  { %21 = sfence }
   0xf   :  { %22 = vsyncpa [#allocation10], 0  ;;  %s2201_s22 = smov 0   ;;  %s2203_s23 = smov 0  }
  0x10   :  { %s2205_s24 = smov 0   ;;  %s2207_s0 = smov 0  }
  0x11   :  { %s2209_s25 = smov 0  }
  0x12 LB: > { %s37_s27 = sadd.s32 1, %s2123_s24  ;;  %s40_s28 = sadd.s32 1, %s2127_s0  ;;  %s2131_s25 = sphi %s2209_s25, %s28_s25   ;;  %s2127_s0 = sphi %s2207_s0, %s3276_s0   ;;  %s2123_s24 = sphi %s2205_s24, %s3275_s24   ;;  %s2119_s23 = sphi %s2203_s23, %s3274_s23   ;;  %s2115_s22 = sphi %s2201_s22, %s3273_s22  }
  0x13   : > { %p38_p5 = scmp.ge.s32.totalorder %s37_s27, 2  ;;  %p1703_p6 = scmp.ge.s32.totalorder %s2131_s25, 1 }
  0x14   : > { %p293_p7 = scmp.lt.s32.totalorder %s2131_s25, 7 }
  0x15   : > { %s3278_s27 = smov (%p38_p5, %s37_s27), 0  ;;  %s3280_s28 = smov (!%p38_p5, %s40_s28), %s2127_s0 }
  0x16   : > { %3128 = sst [smem:[#allocation16_spill]] %s3278_s27  ;;  %p294_p8 = pnand %p1703_p6, %p293_p7 }
  0x17   : > { %p42_p9 = scmp.ge.s32.totalorder %s3280_s28, 3  ;;  %s3115_s29 = sshll.u32 (!%p294_p8), %s2115_s22, 6 }
  0x18   : > { %297 = sbr.rel (%p294_p8) target bundleno = 2185 (0x889), region = 56  ;;  %p324_p10 = scmp.eq.s32.totalorder (!%p294_p8), %s2119_s23, 0 }
  0x19   : > { %s3282_s28 = smov (%p42_p9, %s3280_s28), 0  ;;  %p325_p11 = scmp.eq.s32.totalorder (!%p294_p8), %s2115_s22, 0 }
  0x1a   : > { %3129 = sst [smem:[#allocation17_spill]] %s3282_s28 }
  0x1b   : > { %p326_p12 = pnand (!%p294_p8), %p325_p11, %p324_p10 }
  0x1f   : > { %329 = sbr.rel (%p326_p12) target bundleno = 39 (0x27), region = 60  ;;  %v362_v0 = vld [vmem:[%s3105_s2] sm:$0xff] (!%p326_p12)  ;;  %v364_v1 = vld [vmem:[%s3105_s2 + $0x8] sm:$0xff] (!%p326_p12)  ;;  %v366_v2 = vld [vmem:[%s3105_s2 + $0x10] sm:$0xff] (!%p326_p12) }
  0x20   : > { %363 = vst [vmem:[#allocation2] sm:$0xff] (!%p326_p12), %v362_v0  ;;  %365 = vst [vmem:[#allocation2 + $0x8] sm:$0xff] (!%p326_p12), %v364_v1  ;;  %v368_v3 = vld [vmem:[%s3105_s2 + $0x18] sm:$0xff] (!%p326_p12) }
  0x21   : > { %367 = vst [vmem:[#allocation2 + $0x10] sm:$0xff] (!%p326_p12), %v366_v2  ;;  %369 = vst [vmem:[#allocation2 + $0x18] sm:$0xff] (!%p326_p12), %v368_v3 }
  0x26   : > { %377 = vsyncadd [#allocation6], 512 }
  0x27 PF: > { %p1705_p13 = scmp.ne.s32.totalorder %s2119_s23, 0  ;;  %p381_p0 = scmp.lt.s32.totalorder %s2115_s22, 0 }
  0x28   : > { %s382_s19 = ssub.s32 0, %s2115_s22 }
  0x29   : > { %s1706_s20 = smin.u32 %s2115_s22, %s382_s19 }
  0x2a   : > { %s384_s21 = sand.u32 1, %s1706_s20  }
  0x2b   : > { %s385_s30 = ssub.s32 0, %s384_s21 }
  0x2c   : > { %s3284_s30 = smov (!%p381_p0, %s385_s30), %s384_s21 }
  0x2d   : > { %p1708_p1 = scmp.lt.s32.totalorder %s3284_s30, 0  ;;  %s391_s12 = sadd.s32 2, %s3284_s30 }
  0x2f   : > { %s3286_s12 = smov (!%p1708_p1, %s391_s12), %s3284_s30 }
  0x30   : > { %s393_s13 = scalar_lea.sflag [#allocation6], %s3286_s12 }
  0x31   : > { %2106 = dma.done.wait (%p324_p10), %s393_s13, 512 }
  0x32   : > { %2108 = vsyncadd (%p324_p10), %s393_s13, 4294966784  ;;  %s398_s14 = sadd.s32 1, %s2115_s22 }
  0x33   : > { %p399_p2 = scmp.lt.s32.totalorder %s398_s14, 2 }
  0x35   : > { %p400_p3 = pnand %p399_p2, %p324_p10 }
  0x36   : > { %s1781_s15 = sadd.s32 (!%p400_p3), 64, %s3115_s29  ;;  %p405_p4 = scmp.lt.s32.totalorder (!%p400_p3), %s398_s14, 0 }
  0x37   : > { %403 = sbr.rel (%p400_p3) target bundleno = 68 (0x44), region = 102  ;;  %s406_s16 = ssub.s32 (!%p400_p3), 0, %s398_s14 }
  0x38   : > { %s417_s17 = sshra.s32 (!%p400_p3), %s1781_s15, 3  ;;  %s1710_s18 = smin.u32 (!%p400_p3), %s406_s16, %s398_s14 }
  0x39   : > { %s1713_s19 = sshll.u32 (!%p400_p3), %s417_s17, 2  ;;  %s408_s20 = sand.u32 (!%p400_p3), 1, %s1710_s18  }
  0x3a   : > { %s420_s12 = scalar_lea.vmem (!%p400_p3), %s3105_s2, %s1713_s19  ;;  %s409_s13 = ssub.s32 (!%p400_p3), 0, %s408_s20 }
  0x3b   : > { %s421_s26 = sshra.s32 (!%p400_p3), %s1781_s15, 4  ;;  %v458_v4 = vld [vmem:[%s420_s12] sm:$0xff] (!%p400_p3)  ;;  %v460_v5 = vld [vmem:[%s420_s12 + $0x8] sm:$0xff] (!%p400_p3)  ;;  %v462_v6 = vld [vmem:[%s420_s12 + $0x10] sm:$0xff] (!%p400_p3) }
  0x3c   : > { %s1714_s28 = sshll.u32 (!%p400_p3), %s421_s26, 3  ;;  %v464_v7 = vld [vmem:[%s420_s12 + $0x18] sm:$0xff] (!%p400_p3) }
  0x3d   : > { %s424_s27 = scalar_lea.vmem (!%p400_p3), [#allocation2], %s1714_s28 }
  0x3e   : > { %s3288_s13 = smov (!%p405_p4, %s409_s13), %s408_s20  ;;  %459 = vst [vmem:[%s424_s27] sm:$0xff] %v458_v4  ;;  %461 = vst [vmem:[%s424_s27 + $0x8] sm:$0xff] %v460_v5 }
  0x3f   : > { %p1712_p5 = scmp.lt.s32.totalorder %s3288_s13, 0  ;;  %s415_s29 = sadd.s32 2, %s3288_s13  ;;  %463 = vst [vmem:[%s424_s27 + $0x10] sm:$0xff] %v462_v6  ;;  %465 = vst [vmem:[%s424_s27 + $0x18] sm:$0xff] %v464_v7 }
  0x41   : > { %s3290_s29 = smov (!%p1712_p5, %s415_s29), %s3288_s13 }
  0x42   : > { %s425_s14 = scalar_lea.sflag [#allocation6], %s3290_s29 }
  0x43   : > { %473 = vsyncadd %s425_s14, 512 }
  0x44 PF: > { %s3130_s16 = sshll.u32 %s2115_s22, 6  ;;  %v2023_v12 = vld [vmem:[%s3104_s1] sm:$0xff] (!%p1705_p13)   ;;  %v2024_v13 = vld [vmem:[%s3104_s1 + $0x8] sm:$0xff] (!%p1705_p13)   ;;  %v2025_v14 = vld [vmem:[%s3104_s1 + $0x10] sm:$0xff] (!%p1705_p13)   ;;  %vm639_vm0 = vcmask (!%p1705_p13), 1040384   ;;  %vm626_vm1 = vcmask (!%p1705_p13), 15360  }
  0x45   : > { %s474_s15 = sshra.s32 %s3130_s16, 4  ;;  %1843 = vmatprep.subr.bf16.mxu0 (!%p1705_p13), %v2023_v12  ;;  %v2026_v15 = vld [vmem:[%s3104_s1 + $0x18] sm:$0xff] (!%p1705_p13)   ;;  %v2027_v16 = vld [vmem:[%s3104_s1 + $0x20] sm:$0xff] (!%p1705_p13)   ;;  %v2028_v17 = vld [vmem:[%s3104_s1 + $0x28] sm:$0xff] (!%p1705_p13)   ;;  %vm722_vm2 = vcmask (!%p1705_p13), 64512  }
  0x46   : > { %s2271_s17 = sshll.u32 %s474_s15, 3  ;;  %484 = sbr.rel (%p1705_p13) target bundleno = 549 (0x225), region = 140  ;;  %1844 = vmatpush3.bf16.msra.mxu0 (!%p1705_p13), %v2023_v12  ;;  %v2029_v18 = vld [vmem:[%s3104_s1 + $0x30] sm:$0xff] (!%p1705_p13)   ;;  %v2030_v19 = vld [vmem:[%s3104_s1 + $0x38] sm:$0xff] (!%p1705_p13)   ;;  %v618_v20 = vld [vmem:[%s3106_s3] sm:$0x1] (!%p1705_p13) }
  0x47   : > { %s477_s26 = scalar_lea.vmem [#allocation2], %s2271_s17  ;;  %1845 = vmatprep.subr.bf16.mxu0 (!%p1705_p13), %v2024_v13  ;;  %1967 = vmatprep.subr.msk.bf16.mxu1 (!%p1705_p13), %vm639_vm0, %v618_v20  ;;  %v641_v21 = vsel (!%p1705_p13), %vm639_vm0, %v618_v20, 0  ;;  %v1725_v34 = vld [vmem:[%s3107_s4] ss:$0 sm:$0xff] (!%p1705_p13)  ;;  %s721_s21 = scalar_lea.vmem (!%p1705_p13), [#allocation3], %s2271_s17 }
  0x48   : > { %1868 = vmatpush3.bf16.msra.mxu1 (!%p1705_p13), %v641_v21 }
  0x4a   : > { %1846 = vmatpush3.bf16.msra.mxu0 (!%p1705_p13), %v2024_v13 }
  0x4b   : > { %v2274_v8 = vld [vmem:[%s477_s26] sm:$0xff]  ;;  %v2276_v9 = vld [vmem:[%s477_s26 + $0x8] sm:$0xff]  ;;  %v2278_v10 = vld [vmem:[%s477_s26 + $0x10] sm:$0xff]  ;;  %1847 = vmatprep.subr.bf16.mxu0 (!%p1705_p13), %v2025_v14 }
  0x4c   : > { %v2280_v11 = vld [vmem:[%s477_s26 + $0x18] sm:$0xff]  ;;  %1859 = vmatprep.mubr.bf16.mxu0 (!%p1705_p13), %v2274_v8 }
  0x4e   : > { %1848 = vmatpush3.bf16.msra.mxu0 %v2025_v14 }
  0x4f   : > { %1849 = vmatprep.subr.bf16.mxu0 %v2026_v15 }
  0x52   : > { %1850 = vmatpush3.bf16.msra.mxu0 %v2026_v15 }
  0x53   : > { %1851 = vmatprep.subr.bf16.mxu0 %v2027_v16 }
  0x56   : > { %1852 = vmatpush3.bf16.msra.mxu0 %v2027_v16 }
  0x57   : > { %1853 = vmatprep.subr.bf16.mxu0 %v2028_v17 }
  0x5a   : > { %1854 = vmatpush3.bf16.msra.mxu0 %v2028_v17 }
  0x5b   : > { %1855 = vmatprep.subr.bf16.mxu0 %v2029_v18 }
  0x5e   : > { %1856 = vmatpush3.bf16.msra.mxu0 %v2029_v18 }
  0x5f   : > { %1857 = vmatprep.subr.bf16.mxu0 %v2030_v19 }
  0x62   : > { %1858 = vmatpush3.bf16.msra.mxu0 %v2030_v19 }
  0x65   : > { %1860 = vmatmul.mubr.bf16.vlgmr.msra.gmra.mrb[0].mxu0 %v2276_v9 }
  0x66   : > { %1863 = vmatprep.mubr.bf16.mxu0 %v2278_v10 }
  0x6d   : > { %1864 = vmatmul.mubr.bf16.gmra.mrb[4].mxu0 %v2280_v11 }
 0x138   : > { %v1861_v22 = vpop.f32.mrb[0].mxu0 }
 0x139   : > { %v583_v23 = vpop.f32.mrb[1].mxu0 }
 0x13a   : > { %v1862_v24 = vpop.f32.mrb[2].mxu0 }
 0x13b   : > { %v615_v25 = vpack.c.bf16 %v1862_v24, %v1861_v22  ;;  %v586_v26 = vpop.f32.mrb[3].mxu0 }
 0x13c   : > { %v614_v27 = vpack.c.bf16 %v586_v26, %v583_v23 }
 0x13e   : > { %1869 = vmatprep.mubr.msk.bf16.mxu1 %vm626_vm1, %v614_v27 }
 0x13f   : > { %1870 = vmatmul.mubr.msk.bf16.vlgmr.msra.gmra.mrb[0].mxu1 %vm626_vm1, %v615_v25 }
 0x140   : > { %v1865_v28 = vpop.f32.mrb[4].mxu0 }
 0x141   : > { %v599_v29 = vpop.f32.mrb[5].mxu0 }
 0x142   : > { %v1866_v30 = vpop.f32.mrb[6].mxu0 }
 0x143   : > { %v617_v31 = vpack.c.bf16 %v1866_v30, %v1865_v28  ;;  %v602_v32 = vpop.f32.mrb[7].mxu0 }
 0x144   : > { %v616_v33 = vpack.c.bf16 %v602_v32, %v599_v29 }
 0x146   : > { %1873 = vmatprep.mubr.msk.bf16.mxu1 %vm626_vm1, %v616_v33 }
 0x147   : > { %1874 = vmatmul.mubr.msk.bf16.gmra.mrb[4].mxu1 %vm626_vm1, %v617_v31 }
 0x212   : > { %v1871_v35 = vpop.f32.mrb[0].mxu1 }
 0x213   : > { %v686_v36 = vadd.f32 %v1871_v35, %v1725_v34  ;;  %v677_v37 = vpop.f32.mrb[1].mxu1 }
 0x214   : > { %v678_v38 = vadd.f32 %v1725_v34, %v677_v37  ;;  %v1872_v39 = vpop.f32.mrb[2].mxu1 }
 0x215   : > { %v689_v40 = vadd.f32 %v1872_v39, %v1725_v34  ;;  %v680_v41 = vpop.f32.mrb[3].mxu1  ;;  %v710_v43 = vmax.f32 %v686_v36, 0.0 }
 0x216   : > { %v681_v42 = vadd.f32 %v1725_v34, %v680_v41  ;;  %v708_v45 = vmax.f32 %v678_v38, 0.0 }
 0x217   : > { %v711_v44 = vmax.f32 %v689_v40, 0.0 }
 0x218   : > { %v709_v46 = vmax.f32 %v681_v42, 0.0 }
 0x219   : > { %v717_v47 = vpack.c.bf16 %v711_v44, %v710_v43 }
 0x21a   : > { %v716_v48 = vpack.c.bf16 %v709_v46, %v708_v45  ;;  %v1875_v49 = vpop.f32.mrb[4].mxu1 }
 0x21b   : > { %724 = vst.msk [vmem:[%s721_s21 + $0x8] sm:$0xff] %vm722_vm2, %v717_v47  ;;  %v702_v50 = vadd.f32 %v1875_v49, %v1725_v34  ;;  %v693_v51 = vpop.f32.mrb[5].mxu1 }
 0x21c   : > { %723 = vst.msk [vmem:[%s721_s21] sm:$0xff] %vm722_vm2, %v716_v48  ;;  %v694_v52 = vadd.f32 %v1725_v34, %v693_v51  ;;  %v1876_v53 = vpop.f32.mrb[6].mxu1 }
 0x21d   : > { %v705_v54 = vadd.f32 %v1876_v53, %v1725_v34  ;;  %v696_v55 = vpop.f32.mrb[7].mxu1  ;;  %v714_v57 = vmax.f32 %v702_v50, 0.0 }
 0x21e   : > { %v697_v56 = vadd.f32 %v1725_v34, %v696_v55  ;;  %v712_v59 = vmax.f32 %v694_v52, 0.0 }
 0x21f   : > { %v715_v58 = vmax.f32 %v705_v54, 0.0 }
 0x220   : > { %v713_v60 = vmax.f32 %v697_v56, 0.0 }
 0x221   : > { %v719_v61 = vpack.c.bf16 %v715_v58, %v714_v57 }
 0x222   : > { %v718_v62 = vpack.c.bf16 %v713_v60, %v712_v59 }
 0x223   : > { %726 = vst.msk [vmem:[%s721_s21 + $0x18] sm:$0xff] %vm722_vm2, %v719_v61 }
 0x224   : > { %725 = vst.msk [vmem:[%s721_s21 + $0x10] sm:$0xff] %vm722_vm2, %v718_v62 }
 0x225 PF: > { %p1731_p6 = scmp.ne.s32.totalorder %s2119_s23, 1 }
 0x226   : > { %1893 = vmatprep.mubr.bf16.mxu0 (!%p1731_p6), %v2274_v8  ;;  %v808_v7 = vld [vmem:[%s3108_s5] sm:$0xf] (!%p1731_p6)  ;;  %vm829_vm3 = vcmask (!%p1731_p6), 1043456   ;;  %vm816_vm4 = vcmask (!%p1731_p6), 64512   ;;  %vm912_vm5 = vcmask (!%p1731_p6), 261120   ;;  %s911_s16 = scalar_lea.vmem (!%p1731_p6), [#allocation4], %s2271_s17 }
 0x227   : > { %730 = sbr.rel (%p1731_p6) target bundleno = 1036 (0x40c), region = 144  ;;  %1968 = vmatprep.subr.msk.bf16.mxu1 (!%p1731_p6), %vm829_vm3, %v808_v7  ;;  %v831_v12 = vsel (!%p1731_p6), %vm829_vm3, %v808_v7, 0  ;;  %v1732_v25 = vld [vmem:[%s3109_s6] ss:$0 sm:$0xff] (!%p1731_p6) }
 0x228   : > { %1902 = vmatpush3.bf16.msra.mxu1 (!%p1731_p6), %v831_v12 }
 0x22b   : > { %v731_v63 = vld [vmem:[#allocation3] sm:$0xff] (!%p1731_p6)  ;;  %v732_v0 = vld [vmem:[#allocation3 + $0x8] sm:$0xff] (!%p1731_p6)  ;;  %v733_v1 = vld [vmem:[#allocation3 + $0x10] sm:$0xff] (!%p1731_p6) }
 0x22c   : > { %1877 = vmatprep.subr.bf16.mxu0 (!%p1731_p6), %v731_v63  ;;  %v734_v2 = vld [vmem:[#allocation3 + $0x18] sm:$0xff] (!%p1731_p6)  ;;  %v735_v3 = vld [vmem:[#allocation3 + $0x20] sm:$0xff] (!%p1731_p6)  ;;  %v736_v4 = vld [vmem:[#allocation3 + $0x28] sm:$0xff] (!%p1731_p6) }
 0x22d   : > { %1878 = vmatpush3.bf16.msra.mxu0 (!%p1731_p6), %v731_v63  ;;  %v737_v5 = vld [vmem:[#allocation3 + $0x30] sm:$0xff] (!%p1731_p6)  ;;  %v738_v6 = vld [vmem:[#allocation3 + $0x38] sm:$0xff] (!%p1731_p6) }
 0x22e   : > { %1879 = vmatprep.subr.bf16.mxu0 %v732_v0 }
 0x231   : > { %1880 = vmatpush3.bf16.msra.mxu0 %v732_v0 }
 0x232   : > { %1881 = vmatprep.subr.bf16.mxu0 %v733_v1 }
 0x235   : > { %1882 = vmatpush3.bf16.msra.mxu0 %v733_v1 }
 0x236   : > { %1883 = vmatprep.subr.bf16.mxu0 %v734_v2 }
 0x239   : > { %1884 = vmatpush3.bf16.msra.mxu0 %v734_v2 }
 0x23a   : > { %1885 = vmatprep.subr.bf16.mxu0 %v735_v3 }
 0x23d   : > { %1886 = vmatpush3.bf16.msra.mxu0 %v735_v3 }
 0x23e   : > { %1887 = vmatprep.subr.bf16.mxu0 %v736_v4 }
 0x241   : > { %1888 = vmatpush3.bf16.msra.mxu0 %v736_v4 }
 0x242   : > { %1889 = vmatprep.subr.bf16.mxu0 %v737_v5 }
 0x245   : > { %1890 = vmatpush3.bf16.msra.mxu0 %v737_v5 }
 0x246   : > { %1891 = vmatprep.subr.bf16.mxu0 %v738_v6 }
 0x249   : > { %1892 = vmatpush3.bf16.msra.mxu0 %v738_v6 }
 0x24c   : > { %1894 = vmatmul.mubr.bf16.vlgmr.msra.gmra.mrb[0].mxu0 %v2276_v9 }
 0x24d   : > { %1897 = vmatprep.mubr.bf16.mxu0 %v2278_v10 }
 0x254   : > { %1898 = vmatmul.mubr.bf16.gmra.mrb[4].mxu0 %v2280_v11 }
 0x31f   : > { %v1895_v13 = vpop.f32.mrb[0].mxu0 }
 0x320   : > { %v773_v14 = vpop.f32.mrb[1].mxu0 }
 0x321   : > { %v1896_v15 = vpop.f32.mrb[2].mxu0 }
 0x322   : > { %v805_v16 = vpack.c.bf16 %v1896_v15, %v1895_v13  ;;  %v776_v17 = vpop.f32.mrb[3].mxu0 }
 0x323   : > { %v804_v18 = vpack.c.bf16 %v776_v17, %v773_v14 }
 0x325   : > { %1903 = vmatprep.mubr.msk.bf16.mxu1 %vm816_vm4, %v804_v18 }
 0x326   : > { %1904 = vmatmul.mubr.msk.bf16.vlgmr.msra.gmra.mrb[0].mxu1 %vm816_vm4, %v805_v16 }
 0x327   : > { %v1899_v19 = vpop.f32.mrb[4].mxu0 }
 0x328   : > { %v789_v20 = vpop.f32.mrb[5].mxu0 }
 0x329   : > { %v1900_v21 = vpop.f32.mrb[6].mxu0 }
 0x32a   : > { %v807_v22 = vpack.c.bf16 %v1900_v21, %v1899_v19  ;;  %v792_v23 = vpop.f32.mrb[7].mxu0 }
 0x32b   : > { %v806_v24 = vpack.c.bf16 %v792_v23, %v789_v20 }
 0x32d   : > { %1907 = vmatprep.mubr.msk.bf16.mxu1 %vm816_vm4, %v806_v24 }
 0x32e   : > { %1908 = vmatmul.mubr.msk.bf16.gmra.mrb[4].mxu1 %vm816_vm4, %v807_v22 }
 0x3f9   : > { %v1905_v26 = vpop.f32.mrb[0].mxu1 }
 0x3fa   : > { %v876_v27 = vadd.f32 %v1905_v26, %v1732_v25  ;;  %v867_v28 = vpop.f32.mrb[1].mxu1 }
 0x3fb   : > { %v868_v29 = vadd.f32 %v1732_v25, %v867_v28  ;;  %v1906_v30 = vpop.f32.mrb[2].mxu1 }
 0x3fc   : > { %v879_v31 = vadd.f32 %v1906_v30, %v1732_v25  ;;  %v870_v32 = vpop.f32.mrb[3].mxu1  ;;  %v900_v34 = vmax.f32 %v876_v27, 0.0 }
 0x3fd   : > { %v871_v33 = vadd.f32 %v1732_v25, %v870_v32  ;;  %v898_v36 = vmax.f32 %v868_v29, 0.0 }
 0x3fe   : > { %v901_v35 = vmax.f32 %v879_v31, 0.0 }
 0x3ff   : > { %v899_v37 = vmax.f32 %v871_v33, 0.0 }
 0x400   : > { %v907_v38 = vpack.c.bf16 %v901_v35, %v900_v34 }
 0x401   : > { %v906_v39 = vpack.c.bf16 %v899_v37, %v898_v36  ;;  %v1909_v40 = vpop.f32.mrb[4].mxu1 }
 0x402   : > { %914 = vst.msk [vmem:[%s911_s16 + $0x8] sm:$0xff] %vm912_vm5, %v907_v38  ;;  %v892_v41 = vadd.f32 %v1909_v40, %v1732_v25  ;;  %v883_v42 = vpop.f32.mrb[5].mxu1 }
 0x403   : > { %913 = vst.msk [vmem:[%s911_s16] sm:$0xff] %vm912_vm5, %v906_v39  ;;  %v884_v43 = vadd.f32 %v1732_v25, %v883_v42  ;;  %v1910_v44 = vpop.f32.mrb[6].mxu1 }
 0x404   : > { %v895_v45 = vadd.f32 %v1910_v44, %v1732_v25  ;;  %v886_v46 = vpop.f32.mrb[7].mxu1  ;;  %v904_v48 = vmax.f32 %v892_v41, 0.0 }
 0x405   : > { %v887_v47 = vadd.f32 %v1732_v25, %v886_v46  ;;  %v902_v50 = vmax.f32 %v884_v43, 0.0 }
 0x406   : > { %v905_v49 = vmax.f32 %v895_v45, 0.0 }
 0x407   : > { %v903_v51 = vmax.f32 %v887_v47, 0.0 }
 0x408   : > { %v909_v52 = vpack.c.bf16 %v905_v49, %v904_v48 }
 0x409   : > { %v908_v53 = vpack.c.bf16 %v903_v51, %v902_v50 }
 0x40a   : > { %916 = vst.msk [vmem:[%s911_s16 + $0x18] sm:$0xff] %vm912_vm5, %v909_v52 }
 0x40b   : > { %915 = vst.msk [vmem:[%s911_s16 + $0x10] sm:$0xff] %vm912_vm5, %v908_v53 }
 0x40c PF: > { %p917_p7 = scmp.eq.s32.totalorder %s2119_s23, 2  ;;  %p1738_p8 = scmp.ne.s32.totalorder %s2119_s23, 2 }
 0x40d   : > { %1927 = vmatprep.mubr.bf16.mxu0 (!%p1738_p8), %v2274_v8  ;;  %v2031_v56 = vld [vmem:[%s3110_s7] sm:$0xff] (!%p1738_p8)   ;;  %v2032_v62 = vld [vmem:[%s3110_s7 + $0x8] sm:$0xff] (!%p1738_p8)   ;;  %vm1021_vm6 = vcmask (!%p1738_p8), 261120   ;;  %s1104_s19 = scalar_lea.vmem (!%p1738_p8), [#allocation5], %s2271_s17 }
 0x40e   : > { %920 = sbr.rel (%p1738_p8) target bundleno = 1521 (0x5f1), region = 148  ;;  %1935 = vmatprep.subr.bf16.mxu1 (!%p1738_p8), %v2031_v56  ;;  %v1739_v13 = vld [vmem:[%s3111_s8] ss:$0 sm:$0xff] (!%p1738_p8) }
 0x40f   : > { %1936 = vmatpush3.bf16.msra.mxu1 (!%p1738_p8), %v2031_v56 }
 0x410   : > { %1937 = vmatprep.subr.bf16.mxu1 (!%p1738_p8), %v2032_v62 }
 0x412   : > { %v921_v54 = vld [vmem:[#allocation4] sm:$0xff] (!%p1738_p8)  ;;  %v922_v55 = vld [vmem:[#allocation4 + $0x8] sm:$0xff] (!%p1738_p8)  ;;  %v923_v57 = vld [vmem:[#allocation4 + $0x10] sm:$0xff] (!%p1738_p8) }
 0x413   : > { %1911 = vmatprep.subr.bf16.mxu0 (!%p1738_p8), %v921_v54  ;;  %v924_v58 = vld [vmem:[#allocation4 + $0x18] sm:$0xff] (!%p1738_p8)  ;;  %v925_v59 = vld [vmem:[#allocation4 + $0x20] sm:$0xff] (!%p1738_p8)  ;;  %v926_v60 = vld [vmem:[#allocation4 + $0x28] sm:$0xff] (!%p1738_p8)  ;;  %1938 = vmatpush3.bf16.msra.mxu1 (!%p1738_p8), %v2032_v62 }
 0x414   : > { %1912 = vmatpush3.bf16.msra.mxu0 (!%p1738_p8), %v921_v54  ;;  %v927_v8 = vld [vmem:[#allocation4 + $0x30] sm:$0xff] (!%p1738_p8)  ;;  %v928_v61 = vld [vmem:[#allocation4 + $0x38] sm:$0xff] (!%p1738_p8) }
 0x415   : > { %1913 = vmatprep.subr.bf16.mxu0 %v922_v55 }
 0x418   : > { %1914 = vmatpush3.bf16.msra.mxu0 %v922_v55 }
 0x419   : > { %1915 = vmatprep.subr.bf16.mxu0 %v923_v57 }
 0x41c   : > { %1916 = vmatpush3.bf16.msra.mxu0 %v923_v57 }
 0x41d   : > { %1917 = vmatprep.subr.bf16.mxu0 %v924_v58 }
 0x420   : > { %1918 = vmatpush3.bf16.msra.mxu0 %v924_v58 }
 0x421   : > { %1919 = vmatprep.subr.bf16.mxu0 %v925_v59 }
 0x424   : > { %1920 = vmatpush3.bf16.msra.mxu0 %v925_v59 }
 0x425   : > { %1921 = vmatprep.subr.bf16.mxu0 %v926_v60 }
 0x428   : > { %1922 = vmatpush3.bf16.msra.mxu0 %v926_v60 }
 0x429   : > { %1923 = vmatprep.subr.bf16.mxu0 %v927_v8 }
 0x42c   : > { %1924 = vmatpush3.bf16.msra.mxu0 %v927_v8 }
 0x42d   : > { %1925 = vmatprep.subr.bf16.mxu0 %v928_v61 }
 0x430   : > { %1926 = vmatpush3.bf16.msra.mxu0 %v928_v61 }
 0x433   : > { %1928 = vmatmul.mubr.bf16.vlgmr.msra.gmra.mrb[0].mxu0 %v2276_v9 }
 0x434   : > { %1931 = vmatprep.mubr.bf16.mxu0 %v2278_v10 }
 0x43b   : > { %1932 = vmatmul.mubr.bf16.gmra.mrb[4].mxu0 %v2280_v11 }
 0x506   : > { %v1929_v63 = vpop.f32.mrb[0].mxu0 }
 0x507   : > { %v963_v0 = vpop.f32.mrb[1].mxu0 }
 0x508   : > { %v1930_v1 = vpop.f32.mrb[2].mxu0 }
 0x509   : > { %v995_v2 = vpack.c.bf16 %v1930_v1, %v1929_v63  ;;  %v966_v3 = vpop.f32.mrb[3].mxu0 }
 0x50a   : > { %v994_v4 = vpack.c.bf16 %v966_v3, %v963_v0 }
 0x50c   : > { %1939 = vmatprep.mubr.msk.bf16.mxu1 %vm1021_vm6, %v994_v4 }
 0x50d   : > { %1940 = vmatmul.mubr.msk.bf16.vlgmr.msra.gmra.mrb[0].mxu1 %vm1021_vm6, %v995_v2 }
 0x50e   : > { %v1933_v9 = vpop.f32.mrb[4].mxu0 }
 0x50f   : > { %v979_v5 = vpop.f32.mrb[5].mxu0 }
 0x510   : > { %v1934_v10 = vpop.f32.mrb[6].mxu0 }
 0x511   : > { %v997_v6 = vpack.c.bf16 %v1934_v10, %v1933_v9  ;;  %v982_v11 = vpop.f32.mrb[7].mxu0 }
 0x512   : > { %v996_v7 = vpack.c.bf16 %v982_v11, %v979_v5 }
 0x514   : > { %1943 = vmatprep.mubr.msk.bf16.mxu1 %vm1021_vm6, %v996_v7 }
 0x515   : > { %1944 = vmatmul.mubr.msk.bf16.gmra.mrb[4].mxu1 %vm1021_vm6, %v997_v6 }
 0x5e0   : > { %v1941_v12 = vpop.f32.mrb[0].mxu1 }
 0x5e1   : > { %v1068_v14 = vpop.f32.mrb[1].mxu1  ;;  %v1077_v16 = vadd.f32 %v1941_v12, %v1739_v13 }
 0x5e2   : > { %v1942_v15 = vpop.f32.mrb[2].mxu1  ;;  %v1069_v19 = vadd.f32 %v1739_v13, %v1068_v14 }
 0x5e3   : > { %v1080_v17 = vadd.f32 %v1942_v15, %v1739_v13  ;;  %v1071_v18 = vpop.f32.mrb[3].mxu1 }
 0x5e4   : > { %v1072_v20 = vadd.f32 %v1739_v13, %v1071_v18 }
 0x5e5   : > { %v1100_v21 = vpack.c.bf16 %v1080_v17, %v1077_v16 }
 0x5e6   : > { %v1099_v22 = vpack.c.bf16 %v1072_v20, %v1069_v19 }
 0x5e7   : > { %1106 = vst [vmem:[%s1104_s19 + $0x8] sm:$0xff] %v1100_v21 }
 0x5e8   : > { %1105 = vst [vmem:[%s1104_s19] sm:$0xff] %v1099_v22  ;;  %v1945_v23 = vpop.f32.mrb[4].mxu1 }
 0x5e9   : > { %v1084_v24 = vpop.f32.mrb[5].mxu1  ;;  %v1093_v26 = vadd.f32 %v1945_v23, %v1739_v13 }
 0x5ea   : > { %v1946_v25 = vpop.f32.mrb[6].mxu1  ;;  %v1085_v29 = vadd.f32 %v1739_v13, %v1084_v24 }
 0x5eb   : > { %v1096_v27 = vadd.f32 %v1946_v25, %v1739_v13  ;;  %v1087_v28 = vpop.f32.mrb[7].mxu1 }
 0x5ec   : > { %v1088_v30 = vadd.f32 %v1739_v13, %v1087_v28 }
 0x5ed   : > { %v1102_v31 = vpack.c.bf16 %v1096_v27, %v1093_v26 }
 0x5ee   : > { %v1101_v32 = vpack.c.bf16 %v1088_v30, %v1085_v29 }
 0x5ef   : > { %1108 = vst [vmem:[%s1104_s19 + $0x18] sm:$0xff] %v1102_v31 }
 0x5f0   : > { %1107 = vst [vmem:[%s1104_s19 + $0x10] sm:$0xff] %v1101_v32 }
 0x5f1 PF: > { %p1109_p9 = scmp.eq.s32.totalorder %s2115_s22, 1 }
 0x5f3   : > { %p1110_p10 = pnand %p1109_p9, %p917_p7 }
 0x5f4   : > { %v2033_v33 = vld [vmem:[%s3112_s9] sm:$0xff] (!%p1110_p10)   ;;  %v2134_v34 = vmov (!%p1110_p10), 0.0   ;;  %v2034_v35 = vld [vmem:[%s3112_s9 + $0x8] sm:$0xff] (!%p1110_p10)   ;;  %vm2135_vm7 = vmmov (!%p1110_p10), 0   ;;  %v2035_v36 = vld [vmem:[%s3112_s9 + $0x10] sm:$0xff] (!%p1110_p10)   ;;  %v1122_v39 = vlaneseq (!%p1110_p10)  ;;  %s1139_s15 = sld [smem:[#allocation8]] (!%p1110_p10) }
 0x5f5   : > { %1113 = sbr.rel (%p1110_p10) target bundleno = 2160 (0x870), region = 152  ;;  %1947 = vmatprep.subr.bf16.mxu0 (!%p1110_p10), %v2134_v34  ;;  %1963 = vmatprep.mubr.msk.bf16.mxu0 (!%p1110_p10), %vm2135_vm7, %v2134_v34  ;;  %v2036_v37 = vld [vmem:[%s3112_s9 + $0x18] sm:$0xff] (!%p1110_p10)   ;;  %v2037_v38 = vld [vmem:[%s3112_s9 + $0x20] sm:$0xff] (!%p1110_p10)   ;;  %s1747_s26 = sld [smem:[#allocation8 + $0x1]] (!%p1110_p10)  ;;  %v2038_v40 = vld [vmem:[%s3112_s9 + $0x28] sm:$0xff] (!%p1110_p10)   ;;  %v3131_v54 = vmov (!%p1110_p10), 0 }
 0x5f6   : > { %1948 = vmatpush3.bf16.msra.mxu0 (!%p1110_p10), %v2033_v33  ;;  %v2376_v41 = vshrl.u32 (!%p1110_p10), %v1122_v39, 7  ;;  %v2039_v42 = vld [vmem:[%s3112_s9 + $0x30] sm:$0xff] (!%p1110_p10)   ;;  %v2040_v50 = vld [vmem:[%s3112_s9 + $0x38] sm:$0xff] (!%p1110_p10)   ;;  %v3135_v57 = vmov (!%p1110_p10), 0  ;;  %v3137_v59 = vmov (!%p1110_p10), 0  ;;  %v3139_v8 = vmov (!%p1110_p10), 0 }
 0x5f7   : > { %1949 = vmatprep.subr.bf16.mxu0 (!%p1110_p10), %v2134_v34  ;;  %v3141_v62 = vmov (!%p1110_p10), 0  ;;  %v3143_v0 = vmov (!%p1110_p10), 0  ;;  %v3145_v2 = vmov (!%p1110_p10), 0  ;;  %v3147_v4 = vmov (!%p1110_p10), 0  ;;  %s1756_s20 = sld [smem:[#allocation8 + $0x2]] (!%p1110_p10)  ;;  %v2709_v39 = vld [vmem:[#allocation5] sm:$0xff] (!%p1110_p10) }
 0x5f8   : > { %v2382_v43 = vadd.s32 (!%p1110_p10), 8, %v2376_v41  ;;  %v2385_v44 = vadd.s32 (!%p1110_p10), 16, %v2376_v41  ;;  %v2392_v47 = vadd.s32 (!%p1110_p10), 24, %v2376_v41  ;;  %v2395_v48 = vadd.s32 (!%p1110_p10), 32, %v2376_v41  ;;  %v2737_v55 = vld [vmem:[#allocation5 + $0x20] sm:$0xff] (!%p1110_p10) }
 0x5f9   : > { %v2398_v49 = vadd.s32 (!%p1110_p10), 40, %v2376_v41  ;;  %v2412_v51 = vadd.s32 (!%p1110_p10), 48, %v2376_v41  ;;  %v2419_v52 = vadd.s32 (!%p1110_p10), 56, %v2376_v41  ;;  %v2426_v53 = vadd.s32 (!%p1110_p10), 64, %v2376_v41 }
 0x5fa   : > { %1950 = vmatpush3.bf16.msra.mxu0 (!%p1110_p10), %v2034_v35  ;;  %v2387_v45 = vstv (!%p1110_p10), %s1139_s15  ;;  %v2441_v56 = vadd.s32 (!%p1110_p10), 72, %v2376_v41  ;;  %v2452_v58 = vadd.s32 (!%p1110_p10), 80, %v2376_v41  ;;  %v2466_v60 = vadd.s32 (!%p1110_p10), 88, %v2376_v41 }
 0x5fb   : > { %1951 = vmatprep.subr.bf16.mxu0 (!%p1110_p10), %v2134_v34  ;;  %v2389_v46 = vstv (!%p1110_p10), %s1747_s26  ;;  %vm1142_vm8 = vcmp.ge.s32.totalorder (!%p1110_p10), %v2376_v41, %v2387_v45  ;;  %vm1143_vm9 = vcmp.ge.s32.totalorder (!%p1110_p10), %v2382_v43, %v2387_v45  ;;  %vm1144_vm12 = vcmp.ge.s32.totalorder (!%p1110_p10), %v2385_v44, %v2387_v45 }
 0x5fc   : > { %vm1159_vm10 = vcmp.lt.s32.totalorder %v2376_v41, %v2389_v46  ;;  %vm1160_vm11 = vcmp.lt.s32.totalorder %v2382_v43, %v2389_v46  ;;  %vm1161_vm13 = vcmp.lt.s32.totalorder %v2385_v44, %v2389_v46  ;;  %vm1145_vm14 = vcmp.ge.s32.totalorder %v2392_v47, %v2387_v45 }
 0x5fd   : > { %vm1162_vm15 = vcmp.lt.s32.totalorder %v2392_v47, %v2389_v46  ;;  %vm1146_vm0 = vcmp.ge.s32.totalorder %v2395_v48, %v2387_v45  ;;  %vm1163_vm1 = vcmp.lt.s32.totalorder %v2395_v48, %v2389_v46  ;;  %vm2432_vm2 = vmand %vm1142_vm8, %vm1159_vm10  ;;  %vm1147_vm4 = vcmp.ge.s32.totalorder %v2398_v49, %v2387_v45 }
 0x5fe   : > { %1952 = vmatpush3.bf16.msra.mxu0 %v2035_v36  ;;  %v3132_v54 = vsel %vm2432_vm2, 4294967295, %v3131_v54  ;;  %vm2436_vm3 = vmand %vm1143_vm9, %vm1160_vm11  ;;  %vm1164_vm5 = vcmp.lt.s32.totalorder %v2398_v49, %v2389_v46  ;;  %vm1148_vm7 = vcmp.ge.s32.totalorder %v2412_v51, %v2387_v45  ;;  %vm1165_vm8 = vcmp.lt.s32.totalorder %v2412_v51, %v2389_v46 }
 0x5ff   : > { %1953 = vmatprep.subr.bf16.mxu0 %v2134_v34  ;;  %vm2447_vm6 = vmand %vm1144_vm12, %vm1161_vm13  ;;  %vm1149_vm10 = vcmp.ge.s32.totalorder %v2419_v52, %v2387_v45  ;;  %vm1166_vm11 = vcmp.lt.s32.totalorder %v2419_v52, %v2389_v46  ;;  %v2483_v61 = vadd.s32 96, %v2376_v41  ;;  %vm1150_vm13 = vcmp.ge.s32.totalorder %v2426_v53, %v2387_v45 }
 0x600   : > { %v3136_v57 = vsel %vm2447_vm6, 4294967295, %v3135_v57  ;;  %vm2461_vm9 = vmand %vm1145_vm14, %vm1162_vm15  ;;  %vm1167_vm14 = vcmp.lt.s32.totalorder %v2426_v53, %v2389_v46  ;;  %v2494_v63 = vadd.s32 104, %v2376_v41  ;;  %v2505_v1 = vadd.s32 112, %v2376_v41 }
 0x601   : > { %v3138_v59 = vsel %vm2461_vm9, 4294967295, %v3137_v59  ;;  %vm2478_vm12 = vmand %vm1146_vm0, %vm1163_vm1  ;;  %vm1151_vm0 = vcmp.ge.s32.totalorder %v2441_v56, %v2387_v45  ;;  %vm1168_vm1 = vcmp.lt.s32.totalorder %v2441_v56, %v2389_v46  ;;  %v2516_v3 = vadd.s32 120, %v2376_v41 }
 0x602   : > { %1954 = vmatpush3.bf16.msra.mxu0 %v2036_v37  ;;  %v3140_v8 = vsel %vm2478_vm12, 4294967295, %v3139_v8  ;;  %vm2489_vm15 = vmand %vm1147_vm4, %vm1164_vm5  ;;  %vm1152_vm4 = vcmp.ge.s32.totalorder %v2452_v58, %v2387_v45  ;;  %vm1169_vm5 = vcmp.lt.s32.totalorder %v2452_v58, %v2389_v46  ;;  %vm1154_vm9 = vcmp.ge.s32.totalorder %v2483_v61, %v2387_v45 }
 0x603   : > { %1955 = vmatprep.subr.bf16.mxu0 %v2134_v34  ;;  %v3142_v62 = vsel %vm2489_vm15, 4294967295, %v3141_v62  ;;  %vm2500_vm12 = vmand %vm1148_vm7, %vm1165_vm8  ;;  %vm1153_vm7 = vcmp.ge.s32.totalorder %v2466_v60, %v2387_v45  ;;  %vm1170_vm8 = vcmp.lt.s32.totalorder %v2466_v60, %v2389_v46  ;;  %v3149_v9 = vmov 0 }
 0x604   : > { %v3144_v0 = vsel %vm2500_vm12, 4294967295, %v3143_v0  ;;  %vm2511_vm15 = vmand %vm1149_vm10, %vm1166_vm11  ;;  %vm1171_vm10 = vcmp.lt.s32.totalorder %v2483_v61, %v2389_v46  ;;  %vm1172_vm6 = vcmp.lt.s32.totalorder %v2494_v63, %v2389_v46  ;;  %v3153_v10 = vmov 0 }
 0x605   : > { %v3146_v2 = vsel %vm2511_vm15, 4294967295, %v3145_v2  ;;  %vm2522_vm12 = vmand %vm1150_vm13, %vm1167_vm14  ;;  %vm1155_vm15 = vcmp.ge.s32.totalorder %v2494_v63, %v2387_v45  ;;  %vm1156_vm14 = vcmp.ge.s32.totalorder %v2505_v1, %v2387_v45  ;;  %v3160_v7 = vmov 0 }
 0x606   : > { %1956 = vmatpush3.bf16.msra.mxu0 %v2037_v38  ;;  %v3148_v4 = vsel %vm2522_vm12, 4294967295, %v3147_v4  ;;  %vm2530_vm11 = vmand %vm1151_vm0, %vm1168_vm1  ;;  %vm1173_vm12 = vcmp.lt.s32.totalorder %v2505_v1, %v2389_v46  ;;  %vm1157_vm1 = vcmp.ge.s32.totalorder %v2516_v3, %v2387_v45  ;;  %v3163_v12 = vmov 0  ;;  %v2723_v45 = vld [vmem:[#allocation5 + $0x18] sm:$0xff] }
 0x607   : > { %1957 = vmatprep.subr.bf16.mxu0 %v2134_v34  ;;  %v3150_v9 = vsel %vm2530_vm11, 4294967295, %v3149_v9  ;;  %vm2538_vm13 = vmand %vm1152_vm4, %vm1169_vm5  ;;  %vm1174_vm11 = vcmp.lt.s32.totalorder %v2516_v3, %v2389_v46  ;;  %v2136_v13 = vmov 0   ;;  %vm3173_vm5 = vnez %v3132_v54 }
 0x608   : > { %vm2546_vm0 = vmand %vm1153_vm7, %vm1170_vm8  ;;  %v2629_v17 = vstv %s1756_s20 }
 0x609   : > { %v3154_v10 = vsel %vm2546_vm0, 4294967295, %v3153_v10  ;;  %vm2554_vm4 = vmand %vm1154_vm9, %vm1171_vm10  ;;  %vm3159_vm0 = vnez %v3136_v57  ;;  %vm3162_vm10 = vnez %v3138_v59  ;;  %v2739_v57 = vld [vmem:[#allocation5 + $0x28] sm:$0xff] }
 0x60a   : > { %1958 = vmatpush3.bf16.msra.mxu0 %v2038_v40  ;;  %vm2564_vm8 = vmand %vm1155_vm15, %vm1172_vm6  ;;  %vm3172_vm7 = vnez %v3154_v10  ;;  %v2719_v40 = vld [vmem:[#allocation5 + $0x8] sm:$0xff] }
 0x60b   : > { %1959 = vmatprep.subr.bf16.mxu0 %v2134_v34  ;;  %vm2571_vm9 = vmand %vm1156_vm14, %vm1173_vm12 }
 0x60c   : > { %v3161_v7 = vsel %vm2571_vm9, 4294967295, %v3160_v7  ;;  %vm2578_vm2 = vmand %vm1157_vm1, %vm1174_vm11  ;;  %vm3168_vm9 = vnez %v3146_v2  ;;  %vm3169_vm1 = vnez %v3148_v4  ;;  %v2765_v2 = vld [vmem:[#allocation5 + $0x30] sm:$0xff]  ;;  %v2767_v4 = vld [vmem:[#allocation5 + $0x38] sm:$0xff] }
 0x60d   : > { %v3164_v12 = vsel %vm2578_vm2, 4294967295, %v3163_v12  ;;  %vm3170_vm2 = vnez %v3150_v9  ;;  %vm3171_vm6 = vmmov %vm2538_vm13 }
 0x60e   : > { %1960 = vmatpush3.bf16.msra.mxu0 %v2039_v42  ;;  %vm1233_vm12 = vmpackc.low %vm3171_vm6, %vm3171_vm6  ;;  %vm1314_vm6 = vcmp.ge.s32.totalorder %v2382_v43, %v2389_v46  ;;  %v2721_v42 = vld [vmem:[#allocation5 + $0x10] sm:$0xff] }
 0x60f   : > { %1961 = vmatprep.subr.bf16.mxu0 %v2134_v34  ;;  %vm3174_vm15 = vmpackc.low %vm3173_vm5, %vm3173_vm5  ;;  %v1249_v25 = vsel %vm1233_vm12, 65537, %v2136_v13 }
 0x610   : > { %v1239_v14 = vsel %vm3174_vm15, 65537, %v2136_v13  ;;  %vm3175_vm13 = vmpackc.low %vm2436_vm3, %vm2436_vm3  ;;  %vm3180_vm15 = vnez %v3142_v62 }
 0x611   : > { %v1240_v15 = vsel %vm3175_vm13, 65537, %v2136_v13  ;;  %vm3176_vm14 = vmpackc.low %vm3159_vm0, %vm3159_vm0  ;;  %vm3178_vm13 = vnez %v3140_v8 }
 0x612   : > { %1962 = vmatpush3.bf16.msra.mxu0 %v2040_v50  ;;  %v1241_v16 = vsel %vm3176_vm14, 65537, %v2136_v13  ;;  %vm1236_vm5 = vmpackc.low %vm2564_vm8, %vm2564_vm8  ;;  %vm3182_vm14 = vnez %v3144_v0  ;;  %v1748_v31 = vcombine.low %v1239_v14, %v1240_v15 }
 0x613   : > { %vm3177_vm3 = vmpackc.low %vm3162_vm10, %vm3162_vm10  ;;  %v1252_v28 = vsel %vm1236_vm5, 65537, %v2136_v13 }
 0x614   : > { %v1242_v18 = vsel %vm3177_vm3, 65537, %v2136_v13  ;;  %vm3179_vm0 = vmpackc.low %vm3178_vm13, %vm3178_vm13  ;;  %vm3184_vm3 = vnez %v3161_v7 }
 0x615   : > { %v1243_v19 = vsel %vm3179_vm0, 65537, %v2136_v13  ;;  %vm3181_vm8 = vmpackc.low %vm3180_vm15, %vm3180_vm15  ;;  %v1749_v32 = vcombine.low %v1241_v16, %v1242_v18 }
 0x616   : > { %v1244_v20 = vsel %vm3181_vm8, 65537, %v2136_v13  ;;  %vm3183_vm10 = vmpackc.low %vm3182_vm14, %vm3182_vm14  ;;  %vm1331_vm14 = vcmp.lt.s32.totalorder %v2382_v43, %v2629_v17 }
 0x617   : > { %v1245_v21 = vsel %vm3183_vm10, 65537, %v2136_v13  ;;  %vm1237_vm11 = vmpackc.low %vm3184_vm3, %vm3184_vm3  ;;  %v1750_v33 = vcombine.low %v1243_v19, %v1244_v20  ;;  %vm2725_vm10 = vcmp.ne.s16.totalorder %v1748_v31, 0  ;;  %vm2729_vm3 = vcmp.ne.s16.totalorder %v1749_v32, 0 }
 0x618   : > { %vm3185_vm13 = vmpackc.low %vm3168_vm9, %vm3168_vm9  ;;  %vm3188_vm9 = vnez %v3164_v12  ;;  %v1253_v29 = vsel %vm1237_vm11, 65537, %v2136_v13  ;;  %v1287_v6 = vsel %vm2725_vm10, %v2709_v39, 4048220490  ;;  %v1288_v11 = vsel %vm2729_vm3, %v2719_v40, 4048220490 }
 0x619   : > { %v1246_v22 = vsel %vm3185_vm13, 65537, %v2136_v13  ;;  %vm3186_vm0 = vmpackc.low %vm3169_vm1, %vm3169_vm1  ;;  %vm3215_vm10 = vcmp.ge.s32.totalorder %v2392_v47, %v2389_v46  ;;  %v3223_v19 = vmov 0 }
 0x61a   : > { %v1247_v23 = vsel %vm3186_vm0, 65537, %v2136_v13  ;;  %vm3187_vm15 = vmpackc.low %vm3170_vm2, %vm3170_vm2  ;;  %v1751_v34 = vcombine.low %v1245_v21, %v1246_v22  ;;  %vm1332_vm0 = vcmp.lt.s32.totalorder %v2385_v44, %v2629_v17 }
 0x61b   : > { %v1248_v24 = vsel %vm3187_vm15, 65537, %v2136_v13  ;;  %vm1238_vm8 = vmpackc.low %vm3188_vm9, %vm3188_vm9  ;;  %vm2741_vm15 = vcmp.ne.s16.totalorder %v1750_v33, 0 }
 0x61c   : > { %vm3189_vm1 = vmpackc.low %vm3172_vm7, %vm3172_vm7  ;;  %v1254_v30 = vsel %vm1238_vm8, 65537, %v2136_v13  ;;  %v1752_v35 = vcombine.low %v1247_v23, %v1248_v24  ;;  %vm1315_vm7 = vcmp.ge.s32.totalorder %v2385_v44, %v2389_v46  ;;  %vm2745_vm9 = vcmp.ne.s16.totalorder %v1751_v34, 0  ;;  %v1765_v24 = vld [vmem:[%s3113_s10] ss:$0 sm:$0xff] }
 0x61d   : > { %v1250_v26 = vsel %vm3189_vm1, 65537, %v2136_v13  ;;  %vm3190_vm2 = vmpackc.low %vm2554_vm4, %vm2554_vm4  ;;  %v1755_v38 = vcombine.low %v1253_v29, %v1254_v30  ;;  %vm1330_vm4 = vcmp.lt.s32.totalorder %v2376_v41, %v2629_v17  ;;  %vm1335_vm1 = vcmp.lt.s32.totalorder %v2398_v49, %v2629_v17 }
 0x61e   : > { %v1251_v27 = vsel %vm3190_vm2, 65537, %v2136_v13  ;;  %v1753_v36 = vcombine.low %v1249_v25, %v1250_v26  ;;  %vm2749_vm8 = vcmp.ne.s16.totalorder %v1752_v35, 0  ;;  %vm3201_vm2 = vcmp.ge.s32.totalorder %v2376_v41, %v2389_v46 }
 0x61f   : > { %v1754_v37 = vcombine.low %v1251_v27, %v1252_v28  ;;  %vm2761_vm13 = vmand %vm3201_vm2, %vm1330_vm4  ;;  %vm2777_vm12 = vcmp.ne.s16.totalorder %v1755_v38, 0  ;;  %v1289_v7 = vsel %vm2741_vm15, %v2721_v42, 4048220490  ;;  %v1290_v12 = vsel %vm2745_vm9, %v2723_v45, 4048220490 }
 0x620   : > { %vm2769_vm5 = vcmp.ne.s16.totalorder %v1753_v36, 0  ;;  %vm2789_vm2 = vmand %vm1314_vm6, %vm1331_vm14  ;;  %v1291_v14 = vsel %vm2749_vm8, %v2737_v55, 4048220490  ;;  %vm1336_vm14 = vcmp.lt.s32.totalorder %v2412_v51, %v2629_v17  ;;  %v3216_v44 = vmov 0 }
 0x621   : > { %vm2773_vm11 = vcmp.ne.s16.totalorder %v1754_v37, 0  ;;  %vm2809_vm6 = vmand %vm1315_vm7, %vm1332_vm0  ;;  %vm3214_vm7 = vcmp.lt.s32.totalorder %v2392_v47, %v2629_v17  ;;  %v1292_v15 = vsel %vm2769_vm5, %v2739_v57, 4048220490  ;;  %v1294_v18 = vsel %vm2777_vm12, %v2767_v4, 4048220490 }
 0x622   : > { %vm2830_vm3 = vmand %vm3215_vm10, %vm3214_vm7  ;;  %v1293_v16 = vsel %vm2773_vm11, %v2765_v2, 4048220490  ;;  %vm1337_vm0 = vcmp.lt.s32.totalorder %v2419_v52, %v2629_v17  ;;  %vm3218_vm15 = vcmp.lt.s32.totalorder %v2395_v48, %v2629_v17  ;;  %vm3219_vm9 = vcmp.ge.s32.totalorder %v2395_v48, %v2389_v46 }
 0x623   : > { %v3217_v44 = vsel %vm2830_vm3, 4294967295, %v3216_v44  ;;  %vm2851_vm8 = vmand %vm3219_vm9, %vm3218_vm15  ;;  %v3220_v47 = vmov 0  ;;  %vm1338_vm5 = vcmp.lt.s32.totalorder %v2426_v53, %v2629_v17  ;;  %vm3222_vm12 = vcmp.ge.s32.totalorder %v2398_v49, %v2389_v46 }
 0x624   : > { %v3221_v47 = vsel %vm2851_vm8, 4294967295, %v3220_v47  ;;  %vm2862_vm7 = vmand %vm3222_vm12, %vm1335_vm1  ;;  %vm1339_vm9 = vcmp.lt.s32.totalorder %v2441_v56, %v2629_v17  ;;  %vm3225_vm4 = vcmp.ge.s32.totalorder %v2412_v51, %v2389_v46  ;;  %v3226_v48 = vmov 0 }
 0x625   : > { %v3224_v19 = vsel %vm2862_vm7, 4294967295, %v3223_v19  ;;  %vm2877_vm8 = vmand %vm3225_vm4, %vm1336_vm14  ;;  %v1295_v49 = vmax.bf16 %v1291_v14, %v1287_v6  ;;  %v1296_v20 = vmax.bf16 %v1292_v15, %v1288_v11  ;;  %v1297_v21 = vmax.bf16 %v1293_v16, %v1289_v7 }
 0x626   : > { %v3227_v48 = vsel %vm2877_vm8, 4294967295, %v3226_v48  ;;  %v1298_v22 = vmax.bf16 %v1294_v18, %v1290_v12  ;;  %vm3228_vm1 = vcmp.ge.s32.totalorder %v2419_v52, %v2389_v46  ;;  %v3229_v23 = vmov 0  ;;  %vm1394_vm3 = vmpackc.low %vm2761_vm13, %vm2761_vm13 }
 0x627   : > { %vm2884_vm12 = vmand %vm3228_vm1, %vm1337_vm0  ;;  %vm1324_vm15 = vcmp.ge.s32.totalorder %v2466_v60, %v2389_v46  ;;  %vm1341_vm4 = vcmp.lt.s32.totalorder %v2466_v60, %v2629_v17  ;;  %vm3231_vm14 = vcmp.ge.s32.totalorder %v2426_v53, %v2389_v46  ;;  %v3232_v51 = vmov 0 }
 0x628   : > { %v3230_v23 = vsel %vm2884_vm12, 4294967295, %v3229_v23  ;;  %vm2895_vm11 = vmand %vm3231_vm14, %vm1338_vm5  ;;  %vm1325_vm10 = vcmp.ge.s32.totalorder %v2483_v61, %v2389_v46  ;;  %vm1342_vm0 = vcmp.lt.s32.totalorder %v2483_v61, %v2629_v17  ;;  %vm3234_vm1 = vcmp.ge.s32.totalorder %v2441_v56, %v2389_v46 }
 0x629   : > { %v3233_v51 = vsel %vm2895_vm11, 4294967295, %v3232_v51  ;;  %vm2906_vm12 = vmand %vm3234_vm1, %vm1339_vm9  ;;  %v3235_v52 = vmov 0  ;;  %vm1326_vm8 = vcmp.ge.s32.totalorder %v2494_v63, %v2389_v46  ;;  %vm1343_vm5 = vcmp.lt.s32.totalorder %v2494_v63, %v2629_v17 }
 0x62a   : > { %v3236_v52 = vsel %vm2906_vm12, 4294967295, %v3235_v52  ;;  %vm3237_vm14 = vcmp.lt.s32.totalorder %v2452_v58, %v2629_v17  ;;  %vm3238_vm11 = vcmp.ge.s32.totalorder %v2452_v58, %v2389_v46  ;;  %v3239_v53 = vmov 0  ;;  %vm2928_vm12 = vmand %vm1324_vm15, %vm1341_vm4 }
 0x62b   : > { %vm2920_vm7 = vmand %vm3238_vm11, %vm3237_vm14  ;;  %v1299_v56 = vmax.bf16 %v1296_v20, %v1295_v49  ;;  %v1300_v60 = vmax.bf16 %v1298_v22, %v1297_v21  ;;  %vm1327_vm9 = vcmp.ge.s32.totalorder %v2505_v1, %v2389_v46  ;;  %vm1344_vm1 = vcmp.lt.s32.totalorder %v2505_v1, %v2629_v17 }
 0x62c   : > { %v3240_v53 = vsel %vm2920_vm7, 4294967295, %v3239_v53  ;;  %vm1328_vm11 = vcmp.ge.s32.totalorder %v2516_v3, %v2389_v46  ;;  %vm1345_vm14 = vcmp.lt.s32.totalorder %v2516_v3, %v2629_v17  ;;  %vm2939_vm7 = vmand %vm1325_vm10, %vm1342_vm0  ;;  %v1410_v46 = vsel %vm1394_vm3, 65537, %v2136_v13 }
 0x62d   : > { %vm1395_vm15 = vmpackc.low %vm2789_vm2, %vm2789_vm2  ;;  %vm3249_vm0 = vnez %v3217_v44  ;;  %v1301_v17 = vmax.bf16 %v1300_v60, %v1299_v56  ;;  %vm3253_vm3 = vnez %v3224_v19 }
 0x62e   : > { %vm2946_vm4 = vmand %vm1326_vm8, %vm1343_vm5  ;;  %v1411_v1 = vsel %vm1395_vm15, 65537, %v2136_v13  ;;  %vm3252_vm5 = vnez %v3221_v47 }
 0x62f   : > { %vm1396_vm13 = vmpackc.low %vm2809_vm6, %vm2809_vm6  ;;  %v1757_v27 = vcombine.low %v1410_v46, %v1411_v1  ;;  %v1302_v31 = vunpack.i.l.bf16 %v1301_v17  ;;  %v1303_v32 = vunpack.i.h.bf16 %v1301_v17 }
 0x630   : > { %vm2955_vm10 = vmand %vm1327_vm9, %vm1344_vm1  ;;  %v1412_v25 = vsel %vm1396_vm13, 65537, %v2136_v13  ;;  %vm3254_vm1 = vnez %v3227_v48  ;;  %vm3256_vm13 = vnez %v3233_v51 }
 0x631   : > { %vm1397_vm2 = vmpackc.low %vm3249_vm0, %vm3249_vm0  ;;  %v1304_v62 = vmax.f32 %v1302_v31, %v1303_v32 }
 0x632   : > { %vm2962_vm8 = vmand %vm1328_vm11, %vm1345_vm14  ;;  %v1413_v26 = vsel %vm1397_vm2, 65537, %v2136_v13  ;;  %vm3255_vm14 = vnez %v3230_v23  ;;  %vm3257_vm2 = vnez %v3236_v52 }
 0x633   : > { %vm1398_vm6 = vmpackc.low %vm3252_vm5, %vm3252_vm5  ;;  %v1758_v30 = vcombine.low %v1412_v25, %v1413_v26  ;;  %v1305_v44 = vrot.slane %v1304_v62, 4 }
 0x634   : > { %vm1399_vm9 = vmpackc.low %vm3253_vm3, %vm3253_vm3  ;;  %v1414_v28 = vsel %vm1398_vm6, 65537, %v2136_v13  ;;  %vm2991_vm6 = vcmp.ne.s16.totalorder %v1757_v27, 0  ;;  %vm3260_vm3 = vnez %v3240_v53 }
 0x635   : > { %vm1400_vm11 = vmpackc.low %vm3254_vm1, %vm3254_vm1  ;;  %v1415_v29 = vsel %vm1399_vm9, 65537, %v2136_v13  ;;  %v1458_v9 = vsel %vm2991_vm6, %v2709_v39, 4048220490  ;;  %v1306_v20 = vmax.f32 %v1304_v62, %v1305_v44  ;;  %vm1484_vm6 = vsmask.f32 256 }
 0x636   : > { %vm1401_vm15 = vmpackc.low %vm3255_vm14, %vm3255_vm14  ;;  %v1416_v33 = vsel %vm1400_vm11, 65537, %v2136_v13  ;;  %v1759_v36 = vcombine.low %v1414_v28, %v1415_v29  ;;  %vm3003_vm11 = vcmp.ne.s16.totalorder %v1758_v30, 0 }
 0x637   : > { %vm1402_vm0 = vmpackc.low %vm3256_vm13, %vm3256_vm13  ;;  %v1417_v34 = vsel %vm1401_vm15, 65537, %v2136_v13  ;;  %v1459_v11 = vsel %vm3003_vm11, %v2719_v40, 4048220490  ;;  %v1307_v23 = vrot.slane %v1306_v20, 2 }
 0x638   : > { %vm1403_vm5 = vmpackc.low %vm3257_vm2, %vm3257_vm2  ;;  %v1418_v35 = vsel %vm1402_vm0, 65537, %v2136_v13  ;;  %v1760_v54 = vcombine.low %v1416_v33, %v1417_v34  ;;  %vm3018_vm15 = vcmp.ne.s16.totalorder %v1759_v36, 0 }
 0x639   : > { %vm1404_vm9 = vmpackc.low %vm3260_vm3, %vm3260_vm3  ;;  %v1419_v38 = vsel %vm1403_vm5, 65537, %v2136_v13  ;;  %v1460_v40 = vsel %vm3018_vm15, %v2721_v42, 4048220490  ;;  %v1308_v53 = vmax.f32 %v1306_v20, %v1307_v23  ;;  %vm1483_vm5 = vcmask 1040384  }
 0x63a   : > { %vm1405_vm1 = vmpackc.low %vm2928_vm12, %vm2928_vm12  ;;  %v1420_v50 = vsel %vm1404_vm9, 65537, %v2136_v13  ;;  %v1761_v59 = vcombine.low %v1418_v35, %v1419_v38  ;;  %vm3040_vm0 = vcmp.ne.s16.totalorder %v1760_v54, 0  ;;  %vm1598_vm9 = vcmask 17408  }
 0x63b   : > { %vm1406_vm14 = vmpackc.low %vm2939_vm7, %vm2939_vm7  ;;  %v1421_v0 = vsel %vm1405_vm1, 65537, %v2136_v13  ;;  %v1461_v19 = vsel %vm3040_vm0, %v2723_v45, 4048220490  ;;  %v1309_v61 = vrot.slane %v1308_v53, 1 }
 0x63c   : > { %vm1407_vm12 = vmpackc.low %vm2946_vm4, %vm2946_vm4  ;;  %v1422_v5 = vsel %vm1406_vm14, 65537, %v2136_v13  ;;  %v1762_v10 = vcombine.low %v1420_v50, %v1421_v0  ;;  %vm3022_vm13 = vcmp.ne.s16.totalorder %v1761_v59, 0 }
 0x63d   : > { %vm1408_vm7 = vmpackc.low %vm2955_vm10, %vm2955_vm10  ;;  %v1423_v39 = vsel %vm1407_vm12, 65537, %v2136_v13  ;;  %v1462_v43 = vsel %vm3022_vm13, %v2737_v55, 4048220490  ;;  %v1310_v63 = vmax.f32 %v1308_v53, %v1309_v61 }
 0x63e   : > { %vm1409_vm4 = vmpackc.low %vm2962_vm8, %vm2962_vm8  ;;  %v1424_v7 = vsel %vm1408_vm7, 65537, %v2136_v13  ;;  %v1763_v12 = vcombine.low %v1422_v5, %v1423_v39  ;;  %vm1455_vm10 = vcmp.ne.s16.totalorder %v1762_v10, 0  ;;  %v1466_v18 = vmax.bf16 %v1462_v43, %v1458_v9 }
 0x63f   : > { %v1425_v15 = vsel %vm1409_vm4, 65537, %v2136_v13  ;;  %v1463_v55 = vsel %vm1455_vm10, %v2739_v57, 4048220490  ;;  %vm1485_vm3 = vmand %vm1483_vm5, %vm1484_vm6 }
 0x640   : > { %v1764_v16 = vcombine.low %v1424_v7, %v1425_v15  ;;  %vm1456_vm2 = vcmp.ne.s16.totalorder %v1763_v12, 0  ;;  %v1467_v47 = vmax.bf16 %v1463_v55, %v1459_v11 }
 0x641   : > { %v1464_v48 = vsel %vm1456_vm2, %v2765_v2, 4048220490 }
 0x642   : > { %vm1457_vm8 = vcmp.ne.s16.totalorder %v1764_v16, 0  ;;  %v1468_v49 = vmax.bf16 %v1464_v48, %v1460_v40  ;;  %v1470_v22 = vmax.bf16 %v1467_v47, %v1466_v18 }
 0x643   : > { %v1465_v13 = vsel %vm1457_vm8, %v2767_v4, 4048220490  ;;  %v1311_v4 = vpack.i.bf16 %v1310_v63, %v1310_v63 }
 0x644   : > { %v1469_v21 = vmax.bf16 %v1465_v13, %v1461_v19 }
 0x646   : > { %v1471_v42 = vmax.bf16 %v1469_v21, %v1468_v49 }
 0x648   : > { %v1472_v57 = vmax.bf16 %v1471_v42, %v1470_v22 }
 0x64a   : > { %v1473_v51 = vunpack.i.l.bf16 %v1472_v57  ;;  %v1474_v52 = vunpack.i.h.bf16 %v1472_v57 }
 0x64c   : > { %v1475_v56 = vmax.f32 %v1473_v51, %v1474_v52 }
 0x64e   : > { %v1476_v60 = vrot.slane %v1475_v56, 4 }
 0x650   : > { %v1477_v58 = vmax.f32 %v1475_v56, %v1476_v60 }
 0x652   : > { %v1478_v45 = vrot.slane %v1477_v58, 2 }
 0x654   : > { %v1479_v2 = vmax.f32 %v1477_v58, %v1478_v45 }
 0x656   : > { %v1480_v46 = vrot.slane %v1479_v2, 1 }
 0x658   : > { %v1481_v1 = vmax.f32 %v1479_v2, %v1480_v46 }
 0x65a   : > { %v1482_v3 = vpack.i.bf16 %v1481_v1, %v1481_v1 }
 0x65c   : > { %v1486_v17 = vsel %vm1485_vm3, %v1311_v4, %v1482_v3 }
 0x65d   : > { %1964 = vmatmul.mubr.bf16.vlgmr.msra.gmra.mrb[0].mxu0 %v1486_v17 }
 0x730   : > { %v1592_v25 = vpop.f32.mrb[0].mxu0 }
 0x731   : > { %v1593_v26 = vadd.f32 %v1765_v24, %v1592_v25  ;;  %v1965_v27 = vpop.f32.mrb[1].mxu0 }
 0x732   : > { %v1595_v28 = vpop.f32.mrb[2].mxu0 }
 0x733   : > { %v1966_v29 = vpop.f32.mrb[3].mxu0  ;;  %v1599_v30 = vsel %vm1598_vm9, %v1593_v26, -inf }
 0x734   : > { %1600 = vmax.xlane.f32.xlu0 %v1599_v30 }
 0x7c1   : > { %v1601_v31 = vpop.xlane.xlu0 %1600 }
 0x7c2   : > { %v1602_v32 = vsub.f32 %v1593_v26, %v1601_v31 }
 0x7c4   : > { %v1603_v33 = vmul.f32 1.442695, %v1602_v32 }
 0x7c6   : > { %2041 = vpow2.f32 %v1603_v33 }
 0x7d0   : > { %v2042_v34 = vpop.eup %2041 }
 0x7d1   : > { %v1605_v35 = vsel %vm1598_vm9, %v2042_v34, 0.0 }
 0x7d2   : > { %1606 = vadd.xlane.f32.xlu0 %v1605_v35 }
 0x85f   : > { %v1607_v36 = vpop.xlane.xlu0 %1606 }
 0x860   : > { %2043 = vlog2.f32 %v1607_v36 }
 0x86a   : > { %v2044_v37 = vpop.eup %2043 }
 0x86b   : > { %v1609_v38 = vmul.f32 0.6931472, %v2044_v37 }
 0x86d   : > { %v1610_v50 = vsub.f32 %v1602_v32, %v1609_v38 }
 0x86f   : > { %1611 = vst.msk [vmem:[#allocation9] sm:$0x3] %vm1598_vm9, %v1610_v50 }
 0x870 PF: > { %s3269_s12 = sadd.s32 4294967295, %s2131_s25   ;;  %s2137_s23 = smov [#allocation9]  }
 0x871   : > { %p3062_p11 = scmp.eq.s32.totalorder %s3269_s12, 5  ;;  %s1619_s13 = sshll.u32 %s2137_s23, 4  ;;  %s1620_s13 = int_to_ptr.vmem [resolvable:$true] %s1619_s13 }
 0x872   : > { %s2057_s14 = scalar_lea.vmem %s1620_s13, 32  ;;  %p2064_p1 = scmp.lt.s32.totalorder %s1620_s13, %s1620_s13 }
 0x873   : > { %p2058_p12 = scmp.ne.s32.totalorder %s1620_s13, %s2057_s14  ;;  %p2065_p2 = scmp.lt.s32.totalorder %s2057_s14, %s2057_s14 }
 0x875   : > { %p2059_p13 = pnand %p2058_p12, %p3062_p11  ;;  %p2066_p3 = por %p2065_p2, %p2064_p1 }
 0x877   : > { %p2060_p0 = pneg %p2059_p13 }
 0x879   : > { %p2067_p4 = pnand %p2066_p3, %p2060_p0 }
 0x87b   : > { %2070 = shalt.err (!%p2067_p4)
}
 0x87c   : > { %s2071_s26 = scalar_lea.hbm %s3114_s11, 32 }
 0x87d   : > { %p2072_p5 = scmp.ne.s32.totalorder %s3114_s11, %s2071_s26  ;;  %p2077_p8 = scmp.lt.u32.totalorder %s2071_s26, %s3114_s11 }
 0x87f   : > { %p2073_p6 = pnand %p2072_p5, %p3062_p11 }
 0x881   : > { %p2074_p7 = pneg %p2073_p6 }
 0x883   : > { %p2079_p9 = pnand %p2077_p8, %p2074_p7 }
 0x885   : > { %2082 = shalt.err (!%p2079_p9)
}
 0x886   : > { %1972 = dma.vmem_to_hbm [thread:$0]  (%p3062_p11), %s1620_s13, 32, %s3114_s11, [#allocation10]  }
 0x887   : > { %2110 = dma.done.wait (%p3062_p11), [#allocation10], 32  }
 0x888   : > { %2112 = vsyncadd (%p3062_p11), [#allocation10], 4294967264 }
 0x889 PF: > { %s28_s25 = sadd.s32 1, %s2131_s25   ;;  %s3271_s20 = sld [smem:[#allocation16_spill]] }
 0x88a   : > { %p25_p10 = scmp.ge.s32.totalorder %s28_s25, 8   ;;  %s3272_s21 = sld [smem:[#allocation17_spill]] }
 0x88b   : > { %s3273_s22 = smov %s2123_s24  ;;  %s3274_s23 = smov %s2127_s0 }
 0x88c   :  { %27 = sbr.rel (!%p25_p10) target bundleno = 18 (0x12), region = 201 }
 0x88f   : > { %s3275_s24 = smov %s3271_s20 }
 0x890   : > { %s3276_s0 = smov %s3272_s21 }
 0x893   :  { %1632 = vsyncpa [#allocation10], 1 }
 0x894   :  { %1634 = vsyncpa [#allocation10 + $0x1], 1 }
 0x895   :  { %1635 = vsyncmov [#allocation6] }
 0x898   :  { %s1636_s30 = vpop.sfrf %1635 }
 0x899   :  { %p1778_p11 = scmp.ne.s32.totalorder %s1636_s30, 0 }
 0x89b   :  { %1640 = shalt.err (%p1778_p11)  }
 0x89c   :  { %1642 = vsyncmov [#allocation6 + $0x1] }
 0x89f   :  { %s1643_s12 = vpop.sfrf %1642 }
 0x8a0   :  { %p1779_p12 = scmp.ne.s32.totalorder %s1643_s12, 0 }
 0x8a2   :  { %1647 = shalt.err (%p1779_p12)  }

</bundles_post_ra>
